<compile_context>
chip_gen: v7x
topology: tpu7x:2x2x1
jax: 0.10.0
libtpu: 0.0.40
codegen_flags: <defaults>
</compile_context>

<pallas_src>
import functools
import math

import jax
import jax.numpy as jnp
from jax.experimental import pallas as pl
from jax.experimental.pallas import tpu as pltpu


# ---------------------------------------------------------------------------
# generation-gated knobs
# ---------------------------------------------------------------------------
def _vmem_budget():
    """Pick (vmem_limit_bytes, token_tile) from the chip's VMEM capacity."""
    mib = 1024 * 1024
    try:
        info = pltpu.get_tpu_info()
        cap = int(getattr(info, "vmem_capacity_bytes", 0) or 0)
    except Exception:
        cap = 0
    if cap >= 120 * mib:            # v5e / v6e: 128 MiB VMEM
        return 100 * mib, 512
    if cap >= 60 * mib:             # v7x: 64 MiB VMEM per TensorCore
        return 48 * mib, 512
    return 32 * mib, 256            # unknown generation -> conservative


_VMEM_LIMIT, _TOKEN_TILE = _vmem_budget()


def _probe_single_buffer_support():
    """Check that pipeline_mode=pl.Buffered(1) works for grid-invariant inputs."""
    def _add(x_ref, w_ref, o_ref):
        o_ref[...] = x_ref[...] + w_ref[...]
    try:
        x = jnp.ones((16, 128), jnp.float32)
        w = jnp.ones((8, 128), jnp.float32)
        out = pl.pallas_call(
            _add,
            out_shape=jax.ShapeDtypeStruct((16, 128), jnp.float32),
            grid=(2,),
            in_specs=[pl.BlockSpec((8, 128), lambda i: (i, 0)),
                      pl.BlockSpec((8, 128), lambda i: (0, 0),
                                   pipeline_mode=pl.Buffered(1))],
            out_specs=pl.BlockSpec((8, 128), lambda i: (i, 0)),
        )(x, w)
        jax.block_until_ready(out)
        return bool(jnp.all(out == 2.0))
    except Exception:
        return False


_SINGLE_BUF_OK = _probe_single_buffer_support()


def _const_spec(block_shape):
    """BlockSpec for a grid-invariant (VMEM-resident) operand on a 1-D grid.

    Single-buffered when supported so big weights are not duplicated in VMEM.
    """
    nd = len(block_shape)
    idx = lambda i: (0,) * nd
    if _SINGLE_BUF_OK:
        return pl.BlockSpec(block_shape, idx, pipeline_mode=pl.Buffered(1))
    return pl.BlockSpec(block_shape, idx)


def _cparams(n_axes):
    return pltpu.CompilerParams(
        dimension_semantics=("parallel",) * n_axes,
        vmem_limit_bytes=_VMEM_LIMIT,
    )


def _tok_tile(m):
    return m if m <= _TOKEN_TILE else _TOKEN_TILE


_SQRT_2_OVER_PI = 0.7978845608028654


def _gelu(x):
    # tanh-approximate GELU (transcendental on the EUP, few VPU ops).
    # TODO(synk): torch.nn.functional.gelu defaults to exact erf; the tanh
    # variant matches to ~1e-3 relative, acceptable for inference.
    return 0.5 * x * (1.0 + jnp.tanh(_SQRT_2_OVER_PI * (x + 0.044715 * x * x * x)))


# ---------------------------------------------------------------------------
# Pallas kernels
# ---------------------------------------------------------------------------
def _layernorm_kernel(x_ref, g_ref, b_ref, o_ref, *, eps):
    h = x_ref[...].astype(jnp.float32)
    mu = jnp.mean(h, axis=-1, keepdims=True)
    var = jnp.mean(jnp.square(h - mu), axis=-1, keepdims=True)
    y = (h - mu) * jax.lax.rsqrt(var + eps) * g_ref[...] + b_ref[...]
    o_ref[...] = y.astype(o_ref.dtype)


def _qkv_kernel(x_ref, wq_ref, wk_ref, wv_ref, bq_ref, bk_ref, bv_ref,
                q_ref, k_ref, v_ref):
    # Three lane-dense [tm, H] projections; bf16 MXU operands, f32 accumulate.
    x = x_ref[...].astype(jnp.bfloat16)
    q_ref[...] = (jnp.dot(x, wq_ref[...], preferred_element_type=jnp.float32)
                  + bq_ref[...]).astype(q_ref.dtype)
    k_ref[...] = (jnp.dot(x, wk_ref[...], preferred_element_type=jnp.float32)
                  + bk_ref[...]).astype(k_ref.dtype)
    v_ref[...] = (jnp.dot(x, wv_ref[...], preferred_element_type=jnp.float32)
                  + bv_ref[...]).astype(v_ref.dtype)


def _attention_kernel(q_ref, k_ref, v_ref, m_ref, o_ref, *,
                      num_heads, head_dim, scale):
    # One batch per grid step; all heads handled here so the output slab is a
    # lane-dense (S, H) block and no XLA head split/merge transposes exist.
    mask = m_ref[...]                                        # (1, S), additive
    out_heads = []
    for h in range(num_heads):
        sl = slice(h * head_dim, (h + 1) * head_dim)
        q = q_ref[:, sl]                                     # (S, Dh) bf16
        k = k_ref[:, sl]
        v = v_ref[:, sl]
        s = jax.lax.dot_general(q, k, (((1,), (1,)), ((), ())),
                                preferred_element_type=jnp.float32)   # (S, S)
        s = s * scale + mask
        s = s - jnp.max(s, axis=-1, keepdims=True)
        p = jnp.exp(s)
        denom = jnp.sum(p, axis=-1, keepdims=True)
        p = (p * pl.reciprocal(denom, approx=True)).astype(jnp.bfloat16)
        out_heads.append(jnp.dot(p, v, preferred_element_type=jnp.float32))
    ctx = jnp.concatenate(out_heads, axis=-1)                # (S, H) f32
    o_ref[...] = ctx.astype(o_ref.dtype)


def _out_add_ln_kernel(x_ref, w_ref, b_ref, r_ref, g_ref, be_ref, o_ref, *, eps):
    # y = LayerNorm(x @ W + b + residual)
    x = x_ref[...].astype(jnp.bfloat16)
    h = (jnp.dot(x, w_ref[...], preferred_element_type=jnp.float32)
         + b_ref[...] + r_ref[...].astype(jnp.float32))
    mu = jnp.mean(h, axis=-1, keepdims=True)
    var = jnp.mean(jnp.square(h - mu), axis=-1, keepdims=True)
    y = (h - mu) * jax.lax.rsqrt(var + eps) * g_ref[...] + be_ref[...]
    o_ref[...] = y.astype(o_ref.dtype)


def _ffn_add_ln_kernel(x_ref, w1_ref, b1_ref, w2_ref, b2_ref, g_ref, be_ref,
                       o_ref, *, eps):
    # y = LayerNorm(gelu(x @ W1 + b1) @ W2 + b2 + x); [tm, I] stays in VMEM.
    x = x_ref[...]
    h = _gelu(jnp.dot(x.astype(jnp.bfloat16), w1_ref[...],
                      preferred_element_type=jnp.float32) + b1_ref[...])
    y = (jnp.dot(h.astype(jnp.bfloat16), w2_ref[...],
                 preferred_element_type=jnp.float32) + b2_ref[...]
         + x.astype(jnp.float32))
    mu = jnp.mean(y, axis=-1, keepdims=True)
    var = jnp.mean(jnp.square(y - mu), axis=-1, keepdims=True)
    y = (y - mu) * jax.lax.rsqrt(var + eps) * g_ref[...] + be_ref[...]
    o_ref[...] = y.astype(o_ref.dtype)


def _head_kernel(x_ref, wd_ref, bd_ref, wo_ref, bo_ref, o_ref):
    # classifier(): x = gelu(dense(x)) applied THREE times with the SAME dense
    # weights (per the PyTorch reference), then out_proj.  Dropout = identity
    # at inference.
    x = x_ref[...].astype(jnp.float32)
    for _ in range(3):
        x = _gelu(jnp.dot(x.astype(jnp.bfloat16), wd_ref[...],
                          preferred_element_type=jnp.float32) + bd_ref[...])
    o_ref[...] = (jnp.dot(x.astype(jnp.bfloat16), wo_ref[...],
                          preferred_element_type=jnp.float32) + bo_ref[...])


# ---------------------------------------------------------------------------
# pallas_call wrappers
# ---------------------------------------------------------------------------
def layernorm(x, gamma, beta, eps=1e-12):
    M, H = x.shape
    tm = _tok_tile(M)
    return pl.pallas_call(
        functools.partial(_layernorm_kernel, eps=eps),
        out_shape=jax.ShapeDtypeStruct((M, H), jnp.bfloat16),
        grid=(pl.cdiv(M, tm),),
        in_specs=[pl.BlockSpec((tm, H), lambda i: (i, 0)),
                  _const_spec((1, H)),
                  _const_spec((1, H))],
        out_specs=pl.BlockSpec((tm, H), lambda i: (i, 0)),
        compiler_params=_cparams(1),
    )(x, gamma, beta)


def qkv_project(x, wq, wk, wv, bq, bk, bv):
    M, H = x.shape
    tm = _tok_tile(M)
    shp = jax.ShapeDtypeStruct((M, H), jnp.bfloat16)
    return pl.pallas_call(
        _qkv_kernel,
        out_shape=(shp, shp, shp),
        grid=(pl.cdiv(M, tm),),
        in_specs=[pl.BlockSpec((tm, H), lambda i: (i, 0)),
                  _const_spec((H, H)), _const_spec((H, H)), _const_spec((H, H)),
                  _const_spec((1, H)), _const_spec((1, H)), _const_spec((1, H))],
        out_specs=(pl.BlockSpec((tm, H), lambda i: (i, 0)),
                   pl.BlockSpec((tm, H), lambda i: (i, 0)),
                   pl.BlockSpec((tm, H), lambda i: (i, 0))),
        compiler_params=_cparams(1),
    )(x, wq, wk, wv, bq, bk, bv)


def attention(q, k, v, mask_add, *, batch, seq, num_heads, head_dim, scale):
    # q/k/v: [B*S, H] bf16; mask_add: [B, 1, S] f32.  Grid over batch so the
    # output block is a lane-dense (S, H) slab of the [B*S, H] context.
    M, H = q.shape
    kern = functools.partial(_attention_kernel, num_heads=num_heads,
                             head_dim=head_dim, scale=scale)
    return pl.pallas_call(
        kern,
        out_shape=jax.ShapeDtypeStruct((M, H), jnp.bfloat16),
        grid=(batch,),
        in_specs=[pl.BlockSpec((seq, H), lambda b: (b, 0)),
                  pl.BlockSpec((seq, H), lambda b: (b, 0)),
                  pl.BlockSpec((seq, H), lambda b: (b, 0)),
                  pl.BlockSpec((None, 1, seq), lambda b: (b, 0, 0))],
        out_specs=pl.BlockSpec((seq, H), lambda b: (b, 0)),
        compiler_params=_cparams(1),
    )(q, k, v, mask_add)


def out_add_layernorm(x, w, b, residual, gamma, beta, eps=1e-12):
    M, K = x.shape
    H = w.shape[1]
    tm = _tok_tile(M)
    return pl.pallas_call(
        functools.partial(_out_add_ln_kernel, eps=eps),
        out_shape=jax.ShapeDtypeStruct((M, H), jnp.bfloat16),
        grid=(pl.cdiv(M, tm),),
        in_specs=[pl.BlockSpec((tm, K), lambda i: (i, 0)),
                  _const_spec((K, H)),
                  _const_spec((1, H)),
                  pl.BlockSpec((tm, H), lambda i: (i, 0)),
                  _const_spec((1, H)),
                  _const_spec((1, H))],
        out_specs=pl.BlockSpec((tm, H), lambda i: (i, 0)),
        compiler_params=_cparams(1),
    )(x, w, b, residual, gamma, beta)


def ffn_add_layernorm(x, w1, b1, w2, b2, gamma, beta, eps=1e-12):
    M, H = x.shape
    I = w1.shape[1]
    tm = _tok_tile(M)
    return pl.pallas_call(
        functools.partial(_ffn_add_ln_kernel, eps=eps),
        out_shape=jax.ShapeDtypeStruct((M, H), jnp.bfloat16),
        grid=(pl.cdiv(M, tm),),
        in_specs=[pl.BlockSpec((tm, H), lambda i: (i, 0)),
                  _const_spec((H, I)),
                  _const_spec((1, I)),
                  _const_spec((I, H)),
                  _const_spec((1, H)),
                  _const_spec((1, H)),
                  _const_spec((1, H))],
        out_specs=pl.BlockSpec((tm, H), lambda i: (i, 0)),
        compiler_params=_cparams(1),
    )(x, w1, b1, w2, b2, gamma, beta)


def classifier_head(x, wd, bd, wo, bo):
    B, H = x.shape
    L = wo.shape[1]
    return pl.pallas_call(
        _head_kernel,
        out_shape=jax.ShapeDtypeStruct((B, L), jnp.float32),
        in_specs=[pl.BlockSpec((B, H), lambda: (0, 0)),
                  pl.BlockSpec((H, H), lambda: (0, 0)),
                  pl.BlockSpec((1, H), lambda: (0, 0)),
                  pl.BlockSpec((H, L), lambda: (0, 0)),
                  pl.BlockSpec((1, L), lambda: (0, 0))],
        out_specs=pl.BlockSpec((B, L), lambda: (0, 0)),
        compiler_params=pltpu.CompilerParams(vmem_limit_bytes=_VMEM_LIMIT),
    )(x, wd, bd, wo, bo)


# ---------------------------------------------------------------------------
# parameters (deterministic synthetic weights, pre-cast / pre-shaped once)
# ---------------------------------------------------------------------------
# TODO(synk): ElectraModel.from_pretrained() checkpoint loading has no in-script
# equivalent; the encoder uses deterministic synthetic weights, same architecture.
def init_params(key, cfg):
    H, I = cfg["hidden"], cfg["intermediate"]
    bf16 = jnp.bfloat16

    def nrm(k, shape, dtype=jnp.float32):
        return (0.02 * jax.random.normal(k, shape, jnp.float32)).astype(dtype)

    keys = iter(jax.random.split(key, 16 + 16 * cfg["layers"]))
    p = {
        "word_emb": nrm(next(keys), (cfg["vocab"], H)),
        "pos_emb": nrm(next(keys), (cfg["max_pos"], H)),
        "type_emb": nrm(next(keys), (2, H)),
        "emb_ln_g": jnp.ones((1, H), jnp.float32),
        "emb_ln_b": jnp.zeros((1, H), jnp.float32),
        "layers": [],
    }
    for _ in range(cfg["layers"]):
        lp = dict(
            wq=nrm(next(keys), (H, H), bf16), bq=jnp.zeros((1, H), jnp.float32),
            wk=nrm(next(keys), (H, H), bf16), bk=jnp.zeros((1, H), jnp.float32),
            wv=nrm(next(keys), (H, H), bf16), bv=jnp.zeros((1, H), jnp.float32),
            wo=nrm(next(keys), (H, H), bf16), bo=jnp.zeros((1, H), jnp.float32),
            ln1_g=jnp.ones((1, H), jnp.float32), ln1_b=jnp.zeros((1, H), jnp.float32),
            w1=nrm(next(keys), (H, I), bf16), b1=jnp.zeros((1, I), jnp.float32),
            w2=nrm(next(keys), (I, H), bf16), b2=jnp.zeros((1, H), jnp.float32),
            ln2_g=jnp.ones((1, H), jnp.float32), ln2_b=jnp.zeros((1, H), jnp.float32),
        )
        p["layers"].append(lp)
    p["dense_w"] = nrm(next(keys), (H, H), bf16)
    p["dense_b"] = jnp.zeros((1, H), jnp.float32)
    p["out_w"] = nrm(next(keys), (H, cfg["num_labels"]), bf16)
    p["out_b"] = jnp.zeros((1, cfg["num_labels"]), jnp.float32)
    return p


# ---------------------------------------------------------------------------
# forward pass
# ---------------------------------------------------------------------------
def electra_classifier_forward(params, input_ids, attention_mask, cfg):
    B, S = input_ids.shape
    H = cfg["hidden"]
    NH = cfg["heads"]
    Dh = H // NH
    M = B * S

    # --- embeddings (gathers are plain-JAX glue; LayerNorm in Pallas) ------
    # TODO(synk): token_type_ids assumed all zeros (type_emb[0]).
    emb = (jnp.take(params["word_emb"], input_ids, axis=0)
           + params["pos_emb"][:S][None, :, :]
           + params["type_emb"][0][None, None, :])
    x = layernorm(emb.reshape(M, H), params["emb_ln_g"], params["emb_ln_b"])  # bf16 [M,H]

    # additive attention mask, one row per batch; all heads reuse it in-kernel.
    mask_add = ((1.0 - attention_mask.astype(jnp.float32)) * -1e9).reshape(B, 1, S)
    scale = 1.0 / math.sqrt(Dh)

    # --- transformer encoder layers ----------------------------------------
    for lp in params["layers"]:
        q, k, v = qkv_project(x, lp["wq"], lp["wk"], lp["wv"],
                              lp["bq"], lp["bk"], lp["bv"])          # bf16 [M,H] x3
        ctx = attention(q, k, v, mask_add, batch=B, seq=S,
                        num_heads=NH, head_dim=Dh, scale=scale)       # bf16 [M,H]
        x = out_add_layernorm(ctx, lp["wo"], lp["bo"], x,
                              lp["ln1_g"], lp["ln1_b"])               # bf16 [M,H]
        x = ffn_add_layernorm(x, lp["w1"], lp["b1"], lp["w2"], lp["b2"],
                              lp["ln2_g"], lp["ln2_b"])               # bf16 [M,H]

    # --- classification head ------------------------------------------------
    cls = x.reshape(B, S, H)[:, 0, :]             # sequence_output[:, 0, :]
    logits = classifier_head(cls, params["dense_w"], params["dense_b"],
                             params["out_w"], params["out_b"])
    return logits


# ---------------------------------------------------------------------------
if __name__ == "__main__":
    cfg = dict(vocab=100, hidden=32, heads=2, intermediate=64,
               layers=2, max_pos=16, num_labels=2)

    key = jax.random.PRNGKey(0)
    pkey, ikey = jax.random.split(key)
    params = init_params(pkey, cfg)

    B, S = 2, 8
    input_ids = jax.random.randint(ikey, (B, S), 0, cfg["vocab"], dtype=jnp.int32)
    attention_mask = jnp.ones((B, S), jnp.int32).at[1, 6:].set(0)

    fwd = jax.jit(lambda p, ids, m: electra_classifier_forward(p, ids, m, cfg))
    logits = fwd(params, input_ids, attention_mask)
    jax.block_until_ready(logits)

    assert logits.shape == (B, cfg["num_labels"])
    assert logits.dtype == jnp.float32
    assert bool(jnp.all(jnp.isfinite(logits)))
    print("KERNEL_OK")
</pallas_src>

<mosaic_0001>
module attributes {stable_mosaic.version = 11 : i64} {
  func.func @_add(%arg0: i32, %arg1: memref<8x128xf32, #tpu.memory_space<vmem>>, %arg2: memref<8x128xf32, #tpu.memory_space<vmem>>, %arg3: memref<8x128xf32, #tpu.memory_space<vmem>>) attributes {dimension_semantics = [#tpu.dimension_semantics<arbitrary>], iteration_bounds = array<i64: 2>, scalar_prefetch = 0 : i64, scratch_operands = 0 : i64, tpu.core_type = #tpu.core_type<tc>, window_params = [{transform_indices = @transform_0, window_bounds = array<i64: 8, 128>}, {pipeline_mode = #tpu.pipeline_mode<synchronous>, transform_indices = @transform_1, window_bounds = array<i64: 8, 128>}, {transform_indices = @transform_2, window_bounds = array<i64: 8, 128>}]} {
    %c0 = arith.constant 0 : index
    %c0_0 = arith.constant 0 : index
    %0 = vector.load %arg1[%c0, %c0_0] : memref<8x128xf32, #tpu.memory_space<vmem>>, vector<8x128xf32>
    %c0_1 = arith.constant 0 : index
    %c0_2 = arith.constant 0 : index
    %1 = vector.load %arg2[%c0_1, %c0_2] : memref<8x128xf32, #tpu.memory_space<vmem>>, vector<8x128xf32>
    %2 = arith.addf %0, %1 : vector<8x128xf32>
    %c0_3 = arith.constant 0 : index
    %c0_4 = arith.constant 0 : index
    %3 = vector.load %arg3[%c0_3, %c0_4] : memref<8x128xf32, #tpu.memory_space<vmem>>, vector<8x128xf32>
    tpu.vector_store %arg3[%c0_3, %c0_4], %2 {strides = array<i32>} : memref<8x128xf32, #tpu.memory_space<vmem>>, vector<8x128xf32>,
    return
  }
  func.func @transform_0(%arg0: i32) -> (i32, i32) {
    %c0_i32 = arith.constant 0 : i32
    %c0_i32_0 = arith.constant 0 : i32
    return %arg0, %c0_i32 : i32, i32
  }
  func.func @transform_1(%arg0: i32) -> (i32, i32) {
    %c0_i32 = arith.constant 0 : i32
    %c0_i32_0 = arith.constant 0 : i32
    %c0_i32_1 = arith.constant 0 : i32
    return %c0_i32, %c0_i32_0 : i32, i32
  }
  func.func @transform_2(%arg0: i32) -> (i32, i32) {
    %c0_i32 = arith.constant 0 : i32
    %c0_i32_0 = arith.constant 0 : i32
    return %arg0, %c0_i32 : i32, i32
  }
}

module attributes {stable_mosaic.version = 11 : i64} {
  func.func @_out_add_ln_kernel(%arg0: i32, %arg1: memref<16x32xbf16, #tpu.memory_space<vmem>>, %arg2: memref<32x32xbf16, #tpu.memory_space<vmem>>, %arg3: memref<1x32xf32, #tpu.memory_space<vmem>>, %arg4: memref<16x32xbf16, #tpu.memory_space<vmem>>, %arg5: memref<1x32xf32, #tpu.memory_space<vmem>>, %arg6: memref<1x32xf32, #tpu.memory_space<vmem>>, %arg7: memref<16x32xbf16, #tpu.memory_space<vmem>>) attributes {dimension_semantics = [#tpu.dimension_semantics<parallel>], iteration_bounds = array<i64: 1>, scalar_prefetch = 0 : i64, scratch_operands = 0 : i64, tpu.core_type = #tpu.core_type<tc>, window_params = [{transform_indices = @transform_0, window_bounds = array<i64: 16, 32>}, {pipeline_mode = #tpu.pipeline_mode<synchronous>, transform_indices = @transform_1, window_bounds = array<i64: 32, 32>}, {pipeline_mode = #tpu.pipeline_mode<synchronous>, transform_indices = @transform_2, window_bounds = array<i64: 1, 32>}, {transform_indices = @transform_3, window_bounds = array<i64: 16, 32>}, {pipeline_mode = #tpu.pipeline_mode<synchronous>, transform_indices = @transform_4, window_bounds = array<i64: 1, 32>}, {pipeline_mode = #tpu.pipeline_mode<synchronous>, transform_indices = @transform_5, window_bounds = array<i64: 1, 32>}, {transform_indices = @transform_6, window_bounds = array<i64: 16, 32>}]} {
    %c0 = arith.constant 0 : index
    %c0_0 = arith.constant 0 : index
    %0 = vector.load %arg1[%c0, %c0_0] : memref<16x32xbf16, #tpu.memory_space<vmem>>, vector<16x32xbf16>
    %c0_1 = arith.constant 0 : index
    %c0_2 = arith.constant 0 : index
    %1 = vector.load %arg2[%c0_1, %c0_2] : memref<32x32xbf16, #tpu.memory_space<vmem>>, vector<32x32xbf16>
    %cst = arith.constant dense<0.000000e+00> : vector<16x32xf32>
    %2 = tpu.matmul %0, %1, %cst {dimension_numbers = #tpu.dot_dimension_numbers<[1], [0], [0], [1], [0, 0, 1, 1], [], []>} : vector<16x32xbf16>, vector<32x32xbf16>, vector<16x32xf32> -> vector<16x32xf32>
    %c0_3 = arith.constant 0 : index
    %c0_4 = arith.constant 0 : index
    %3 = vector.load %arg3[%c0_3, %c0_4] : memref<1x32xf32, #tpu.memory_space<vmem>>, vector<1x32xf32>
    %4 = vector.broadcast %3 : vector<1x32xf32> to vector<16x32xf32>
    %5 = arith.addf %2, %4 : vector<16x32xf32>
    %c0_5 = arith.constant 0 : index
    %c0_6 = arith.constant 0 : index
    %6 = vector.load %arg4[%c0_5, %c0_6] : memref<16x32xbf16, #tpu.memory_space<vmem>>, vector<16x32xbf16>
    %7 = arith.extf %6 : vector<16x32xbf16> to vector<16x32xf32>
    %8 = arith.addf %5, %7 : vector<16x32xf32>
    %cst_7 = arith.constant dense<0.000000e+00> : vector<16xf32>
    %9 = vector.multi_reduction <add>, %8, %cst_7 [1] : vector<16x32xf32> to vector<16xf32>
    %10 = vector.shape_cast %9 : vector<16xf32> to vector<16x1xf32>
    %cst_8 = arith.constant 3.200000e+01 : f32
    %11 = vector.broadcast %cst_8 : f32 to vector<16x1xf32>
    %12 = arith.divf %10, %11 : vector<16x1xf32>
    %13 = vector.broadcast %12 : vector<16x1xf32> to vector<16x32xf32>
    %14 = arith.subf %8, %13 : vector<16x32xf32>
    %15 = arith.mulf %14, %14 : vector<16x32xf32>
    %cst_9 = arith.constant dense<0.000000e+00> : vector<16xf32>
    %16 = vector.multi_reduction <add>, %15, %cst_9 [1] : vector<16x32xf32> to vector<16xf32>
    %17 = vector.shape_cast %16 : vector<16xf32> to vector<16x1xf32>
    %cst_10 = arith.constant 3.200000e+01 : f32
    %18 = vector.broadcast %cst_10 : f32 to vector<16x1xf32>
    %19 = arith.divf %17, %18 : vector<16x1xf32>
    %20 = vector.broadcast %12 : vector<16x1xf32> to vector<16x32xf32>
    %21 = arith.subf %8, %20 : vector<16x32xf32>
    %cst_11 = arith.constant 9.99999996E-13 : f32
    %22 = vector.broadcast %cst_11 : f32 to vector<16x1xf32>
    %23 = arith.addf %19, %22 : vector<16x1xf32>
    %24 = math.rsqrt %23 : vector<16x1xf32>
    %25 = vector.broadcast %24 : vector<16x1xf32> to vector<16x32xf32>
    %26 = arith.mulf %21, %25 : vector<16x32xf32>
    %c0_12 = arith.constant 0 : index
    %c0_13 = arith.constant 0 : index
    %27 = vector.load %arg5[%c0_12, %c0_13] : memref<1x32xf32, #tpu.memory_space<vmem>>, vector<1x32xf32>
    %28 = vector.broadcast %27 : vector<1x32xf32> to vector<16x32xf32>
    %29 = arith.mulf %26, %28 : vector<16x32xf32>
    %c0_14 = arith.constant 0 : index
    %c0_15 = arith.constant 0 : index
    %30 = vector.load %arg6[%c0_14, %c0_15] : memref<1x32xf32, #tpu.memory_space<vmem>>, vector<1x32xf32>
    %31 = vector.broadcast %30 : vector<1x32xf32> to vector<16x32xf32>
    %32 = arith.addf %29, %31 : vector<16x32xf32>
    %33 = arith.truncf %32 : vector<16x32xf32> to vector<16x32xbf16>
    %c0_16 = arith.constant 0 : index
    %c0_17 = arith.constant 0 : index
    %34 = vector.load %arg7[%c0_16, %c0_17] : memref<16x32xbf16, #tpu.memory_space<vmem>>, vector<16x32xbf16>
    tpu.vector_store %arg7[%c0_16, %c0_17], %33 {strides = array<i32>} : memref<16x32xbf16, #tpu.memory_space<vmem>>, vector<16x32xbf16>,
    return
  }
  func.func @transform_0(%arg0: i32) -> (i32, i32) {
    %c0_i32 = arith.constant 0 : i32
    %c0_i32_0 = arith.constant 0 : i32
    return %arg0, %c0_i32 : i32, i32
  }
  func.func @transform_1(%arg0: i32) -> (i32, i32) {
    %c0_i32 = arith.constant 0 : i32
    %c0_i32_0 = arith.constant 0 : i32
    %c0_i32_1 = arith.constant 0 : i32
    return %c0_i32, %c0_i32_0 : i32, i32
  }
  func.func @transform_2(%arg0: i32) -> (i32, i32) {
    %c0_i32 = arith.constant 0 : i32
    %c0_i32_0 = arith.constant 0 : i32
    %c0_i32_1 = arith.constant 0 : i32
    return %c0_i32, %c0_i32_0 : i32, i32
  }
  func.func @transform_3(%arg0: i32) -> (i32, i32) {
    %c0_i32 = arith.constant 0 : i32
    %c0_i32_0 = arith.constant 0 : i32
    return %arg0, %c0_i32 : i32, i32
  }
  func.func @transform_4(%arg0: i32) -> (i32, i32) {
    %c0_i32 = arith.constant 0 : i32
    %c0_i32_0 = arith.constant 0 : i32
    %c0_i32_1 = arith.constant 0 : i32
    return %c0_i32, %c0_i32_0 : i32, i32
  }
  func.func @transform_5(%arg0: i32) -> (i32, i32) {
    %c0_i32 = arith.constant 0 : i32
    %c0_i32_0 = arith.constant 0 : i32
    %c0_i32_1 = arith.constant 0 : i32
    return %c0_i32, %c0_i32_0 : i32, i32
  }
  func.func @transform_6(%arg0: i32) -> (i32, i32) {
    %c0_i32 = arith.constant 0 : i32
    %c0_i32_0 = arith.constant 0 : i32
    return %arg0, %c0_i32 : i32, i32
  }
}

module attributes {stable_mosaic.version = 11 : i64} {
  func.func @_layernorm_kernel(%arg0: i32, %arg1: memref<16x32xf32, #tpu.memory_space<vmem>>, %arg2: memref<1x32xf32, #tpu.memory_space<vmem>>, %arg3: memref<1x32xf32, #tpu.memory_space<vmem>>, %arg4: memref<16x32xbf16, #tpu.memory_space<vmem>>) attributes {dimension_semantics = [#tpu.dimension_semantics<parallel>], iteration_bounds = array<i64: 1>, scalar_prefetch = 0 : i64, scratch_operands = 0 : i64, tpu.core_type = #tpu.core_type<tc>, window_params = [{transform_indices = @transform_0, window_bounds = array<i64: 16, 32>}, {pipeline_mode = #tpu.pipeline_mode<synchronous>, transform_indices = @transform_1, window_bounds = array<i64: 1, 32>}, {pipeline_mode = #tpu.pipeline_mode<synchronous>, transform_indices = @transform_2, window_bounds = array<i64: 1, 32>}, {transform_indices = @transform_3, window_bounds = array<i64: 16, 32>}]} {
    %c0 = arith.constant 0 : index
    %c0_0 = arith.constant 0 : index
    %0 = vector.load %arg1[%c0, %c0_0] : memref<16x32xf32, #tpu.memory_space<vmem>>, vector<16x32xf32>
    %cst = arith.constant dense<0.000000e+00> : vector<16xf32>
    %1 = vector.multi_reduction <add>, %0, %cst [1] : vector<16x32xf32> to vector<16xf32>
    %2 = vector.shape_cast %1 : vector<16xf32> to vector<16x1xf32>
    %cst_1 = arith.constant 3.200000e+01 : f32
    %3 = vector.broadcast %cst_1 : f32 to vector<16x1xf32>
    %4 = arith.divf %2, %3 : vector<16x1xf32>
    %5 = vector.broadcast %4 : vector<16x1xf32> to vector<16x32xf32>
    %6 = arith.subf %0, %5 : vector<16x32xf32>
    %7 = arith.mulf %6, %6 : vector<16x32xf32>
    %cst_2 = arith.constant dense<0.000000e+00> : vector<16xf32>
    %8 = vector.multi_reduction <add>, %7, %cst_2 [1] : vector<16x32xf32> to vector<16xf32>
    %9 = vector.shape_cast %8 : vector<16xf32> to vector<16x1xf32>
    %cst_3 = arith.constant 3.200000e+01 : f32
    %10 = vector.broadcast %cst_3 : f32 to vector<16x1xf32>
    %11 = arith.divf %9, %10 : vector<16x1xf32>
    %12 = vector.broadcast %4 : vector<16x1xf32> to vector<16x32xf32>
    %13 = arith.subf %0, %12 : vector<16x32xf32>
    %cst_4 = arith.constant 9.99999996E-13 : f32
    %14 = vector.broadcast %cst_4 : f32 to vector<16x1xf32>
    %15 = arith.addf %11, %14 : vector<16x1xf32>
    %16 = math.rsqrt %15 : vector<16x1xf32>
    %17 = vector.broadcast %16 : vector<16x1xf32> to vector<16x32xf32>
    %18 = arith.mulf %13, %17 : vector<16x32xf32>
    %c0_5 = arith.constant 0 : index
    %c0_6 = arith.constant 0 : index
    %19 = vector.load %arg2[%c0_5, %c0_6] : memref<1x32xf32, #tpu.memory_space<vmem>>, vector<1x32xf32>
    %20 = vector.broadcast %19 : vector<1x32xf32> to vector<16x32xf32>
    %21 = arith.mulf %18, %20 : vector<16x32xf32>
    %c0_7 = arith.constant 0 : index
    %c0_8 = arith.constant 0 : index
    %22 = vector.load %arg3[%c0_7, %c0_8] : memref<1x32xf32, #tpu.memory_space<vmem>>, vector<1x32xf32>
    %23 = vector.broadcast %22 : vector<1x32xf32> to vector<16x32xf32>
    %24 = arith.addf %21, %23 : vector<16x32xf32>
    %25 = arith.truncf %24 : vector<16x32xf32> to vector<16x32xbf16>
    %c0_9 = arith.constant 0 : index
    %c0_10 = arith.constant 0 : index
    %26 = vector.load %arg4[%c0_9, %c0_10] : memref<16x32xbf16, #tpu.memory_space<vmem>>, vector<16x32xbf16>
    tpu.vector_store %arg4[%c0_9, %c0_10], %25 {strides = array<i32>} : memref<16x32xbf16, #tpu.memory_space<vmem>>, vector<16x32xbf16>,
    return
  }
  func.func @transform_0(%arg0: i32) -> (i32, i32) {
    %c0_i32 = arith.constant 0 : i32
    %c0_i32_0 = arith.constant 0 : i32
    return %arg0, %c0_i32 : i32, i32
  }
  func.func @transform_1(%arg0: i32) -> (i32, i32) {
    %c0_i32 = arith.constant 0 : i32
    %c0_i32_0 = arith.constant 0 : i32
    %c0_i32_1 = arith.constant 0 : i32
    return %c0_i32, %c0_i32_0 : i32, i32
  }
  func.func @transform_2(%arg0: i32) -> (i32, i32) {
    %c0_i32 = arith.constant 0 : i32
    %c0_i32_0 = arith.constant 0 : i32
    %c0_i32_1 = arith.constant 0 : i32
    return %c0_i32, %c0_i32_0 : i32, i32
  }
  func.func @transform_3(%arg0: i32) -> (i32, i32) {
    %c0_i32 = arith.constant 0 : i32
    %c0_i32_0 = arith.constant 0 : i32
    return %arg0, %c0_i32 : i32, i32
  }
}

module attributes {stable_mosaic.version = 11 : i64} {
  func.func @_attention_kernel(%arg0: i32, %arg1: memref<8x32xbf16, #tpu.memory_space<vmem>>, %arg2: memref<8x32xbf16, #tpu.memory_space<vmem>>, %arg3: memref<8x32xbf16, #tpu.memory_space<vmem>>, %arg4: memref<1x1x8xf32, #tpu.memory_space<vmem>>, %arg5: memref<8x32xbf16, #tpu.memory_space<vmem>>) attributes {dimension_semantics = [#tpu.dimension_semantics<parallel>], iteration_bounds = array<i64: 2>, scalar_prefetch = 0 : i64, scratch_operands = 0 : i64, tpu.core_type = #tpu.core_type<tc>, window_params = [{transform_indices = @transform_0, window_bounds = array<i64: 8, 32>}, {transform_indices = @transform_1, window_bounds = array<i64: 8, 32>}, {transform_indices = @transform_2, window_bounds = array<i64: 8, 32>}, {transform_indices = @transform_3, window_bounds = array<i64: 1, 1, 8>}, {transform_indices = @transform_4, window_bounds = array<i64: 8, 32>}]} {
    %c0 = arith.constant 0 : index
    %c0_0 = arith.constant 0 : index
    %c0_1 = arith.constant 0 : index
    %0 = vector.load %arg4[%c0, %c0_0, %c0_1] : memref<1x1x8xf32, #tpu.memory_space<vmem>>, vector<1x1x8xf32>
    %1 = vector.shape_cast %0 : vector<1x1x8xf32> to vector<1x8xf32>
    %c0_2 = arith.constant 0 : index
    %c0_3 = arith.constant 0 : index
    %2 = vector.load %arg1[%c0_2, %c0_3] : memref<8x32xbf16, #tpu.memory_space<vmem>>, vector<8x16xbf16>
    %c0_4 = arith.constant 0 : index
    %c0_5 = arith.constant 0 : index
    %3 = vector.load %arg2[%c0_4, %c0_5] : memref<8x32xbf16, #tpu.memory_space<vmem>>, vector<8x16xbf16>
    %c0_6 = arith.constant 0 : index
    %c0_7 = arith.constant 0 : index
    %4 = vector.load %arg3[%c0_6, %c0_7] : memref<8x32xbf16, #tpu.memory_space<vmem>>, vector<8x16xbf16>
    %cst = arith.constant dense<0.000000e+00> : vector<8x8xf32>
    %5 = tpu.matmul %2, %3, %cst {dimension_numbers = #tpu.dot_dimension_numbers<[1], [1], [0], [0], [0, 0, 1, 0], [], []>} : vector<8x16xbf16>, vector<8x16xbf16>, vector<8x8xf32> -> vector<8x8xf32>
    %cst_8 = arith.constant 2.500000e-01 : f32
    %6 = vector.broadcast %cst_8 : f32 to vector<8x8xf32>
    %7 = arith.mulf %5, %6 : vector<8x8xf32>
    %8 = vector.broadcast %1 : vector<1x8xf32> to vector<8x8xf32>
    %9 = arith.addf %7, %8 : vector<8x8xf32>
    %cst_9 = arith.constant dense<0xFF800000> : vector<8xf32>
    %10 = vector.multi_reduction <maximumf>, %9, %cst_9 [1] : vector<8x8xf32> to vector<8xf32>
    %11 = vector.shape_cast %10 : vector<8xf32> to vector<8x1xf32>
    %12 = vector.broadcast %11 : vector<8x1xf32> to vector<8x8xf32>
    %13 = arith.subf %9, %12 : vector<8x8xf32>
    %14 = math.exp %13 : vector<8x8xf32>
    %cst_10 = arith.constant dense<0.000000e+00> : vector<8xf32>
    %15 = vector.multi_reduction <add>, %14, %cst_10 [1] : vector<8x8xf32> to vector<8xf32>
    %16 = vector.shape_cast %15 : vector<8xf32> to vector<8x1xf32>
    %17 = tpu.reciprocal %16 {approx = true} : vector<8x1xf32> -> vector<8x1xf32>
    %18 = vector.broadcast %17 : vector<8x1xf32> to vector<8x8xf32>
    %19 = arith.mulf %14, %18 : vector<8x8xf32>
    %20 = arith.truncf %19 : vector<8x8xf32> to vector<8x8xbf16>
    %cst_11 = arith.constant dense<0.000000e+00> : vector<8x16xf32>
    %21 = tpu.matmul %20, %4, %cst_11 {dimension_numbers = #tpu.dot_dimension_numbers<[1], [0], [0], [1], [0, 0, 1, 1], [], []>} : vector<8x8xbf16>, vector<8x16xbf16>, vector<8x16xf32> -> vector<8x16xf32>
    %c0_12 = arith.constant 0 : index
    %c16 = arith.constant 16 : index
    %22 = vector.load %arg1[%c0_12, %c16] : memref<8x32xbf16, #tpu.memory_space<vmem>>, vector<8x16xbf16>
    %c0_13 = arith.constant 0 : index
    %c16_14 = arith.constant 16 : index
    %23 = vector.load %arg2[%c0_13, %c16_14] : memref<8x32xbf16, #tpu.memory_space<vmem>>, vector<8x16xbf16>
    %c0_15 = arith.constant 0 : index
    %c16_16 = arith.constant 16 : index
    %24 = vector.load %arg3[%c0_15, %c16_16] : memref<8x32xbf16, #tpu.memory_space<vmem>>, vector<8x16xbf16>
    %cst_17 = arith.constant dense<0.000000e+00> : vector<8x8xf32>
    %25 = tpu.matmul %22, %23, %cst_17 {dimension_numbers = #tpu.dot_dimension_numbers<[1], [1], [0], [0], [0, 0, 1, 0], [], []>} : vector<8x16xbf16>, vector<8x16xbf16>, vector<8x8xf32> -> vector<8x8xf32>
    %cst_18 = arith.constant 2.500000e-01 : f32
    %26 = vector.broadcast %cst_18 : f32 to vector<8x8xf32>
    %27 = arith.mulf %25, %26 : vector<8x8xf32>
    %28 = vector.broadcast %1 : vector<1x8xf32> to vector<8x8xf32>
    %29 = arith.addf %27, %28 : vector<8x8xf32>
    %cst_19 = arith.constant dense<0xFF800000> : vector<8xf32>
    %30 = vector.multi_reduction <maximumf>, %29, %cst_19 [1] : vector<8x8xf32> to vector<8xf32>
    %31 = vector.shape_cast %30 : vector<8xf32> to vector<8x1xf32>
    %32 = vector.broadcast %31 : vector<8x1xf32> to vector<8x8xf32>
    %33 = arith.subf %29, %32 : vector<8x8xf32>
    %34 = math.exp %33 : vector<8x8xf32>
    %cst_20 = arith.constant dense<0.000000e+00> : vector<8xf32>
    %35 = vector.multi_reduction <add>, %34, %cst_20 [1] : vector<8x8xf32> to vector<8xf32>
    %36 = vector.shape_cast %35 : vector<8xf32> to vector<8x1xf32>
    %37 = tpu.reciprocal %36 {approx = true} : vector<8x1xf32> -> vector<8x1xf32>
    %38 = vector.broadcast %37 : vector<8x1xf32> to vector<8x8xf32>
    %39 = arith.mulf %34, %38 : vector<8x8xf32>
    %40 = arith.truncf %39 : vector<8x8xf32> to vector<8x8xbf16>
    %cst_21 = arith.constant dense<0.000000e+00> : vector<8x16xf32>
    %41 = tpu.matmul %40, %24, %cst_21 {dimension_numbers = #tpu.dot_dimension_numbers<[1], [0], [0], [1], [0, 0, 1, 1], [], []>} : vector<8x8xbf16>, vector<8x16xbf16>, vector<8x16xf32> -> vector<8x16xf32>
    %42 = tpu.concatenate %21, %41 in 1 : vector<8x16xf32>, vector<8x16xf32> -> vector<8x32xf32>
    %43 = arith.truncf %42 : vector<8x32xf32> to vector<8x32xbf16>
    %c0_22 = arith.constant 0 : index
    %c0_23 = arith.constant 0 : index
    %44 = vector.load %arg5[%c0_22, %c0_23] : memref<8x32xbf16, #tpu.memory_space<vmem>>, vector<8x32xbf16>
    tpu.vector_store %arg5[%c0_22, %c0_23], %43 {strides = array<i32>} : memref<8x32xbf16, #tpu.memory_space<vmem>>, vector<8x32xbf16>,
    return
  }
  func.func @transform_0(%arg0: i32) -> (i32, i32) {
    %c0_i32 = arith.constant 0 : i32
    %c0_i32_0 = arith.constant 0 : i32
    return %arg0, %c0_i32 : i32, i32
  }
  func.func @transform_1(%arg0: i32) -> (i32, i32) {
    %c0_i32 = arith.constant 0 : i32
    %c0_i32_0 = arith.constant 0 : i32
    return %arg0, %c0_i32 : i32, i32
  }
  func.func @transform_2(%arg0: i32) -> (i32, i32) {
    %c0_i32 = arith.constant 0 : i32
    %c0_i32_0 = arith.constant 0 : i32
    return %arg0, %c0_i32 : i32, i32
  }
  func.func @transform_3(%arg0: i32) -> (i32, i32, i32) {
    %c0_i32 = arith.constant 0 : i32
    %c0_i32_0 = arith.constant 0 : i32
    %c0_i32_1 = arith.constant 0 : i32
    return %arg0, %c0_i32, %c0_i32_0 : i32, i32, i32
  }
  func.func @transform_4(%arg0: i32) -> (i32, i32) {
    %c0_i32 = arith.constant 0 : i32
    %c0_i32_0 = arith.constant 0 : i32
    return %arg0, %c0_i32 : i32, i32
  }
}

module attributes {stable_mosaic.version = 11 : i64} {
  func.func @_qkv_kernel(%arg0: i32, %arg1: memref<16x32xbf16, #tpu.memory_space<vmem>>, %arg2: memref<32x32xbf16, #tpu.memory_space<vmem>>, %arg3: memref<32x32xbf16, #tpu.memory_space<vmem>>, %arg4: memref<32x32xbf16, #tpu.memory_space<vmem>>, %arg5: memref<1x32xf32, #tpu.memory_space<vmem>>, %arg6: memref<1x32xf32, #tpu.memory_space<vmem>>, %arg7: memref<1x32xf32, #tpu.memory_space<vmem>>, %arg8: memref<16x32xbf16, #tpu.memory_space<vmem>>, %arg9: memref<16x32xbf16, #tpu.memory_space<vmem>>, %arg10: memref<16x32xbf16, #tpu.memory_space<vmem>>) attributes {dimension_semantics = [#tpu.dimension_semantics<parallel>], iteration_bounds = array<i64: 1>, scalar_prefetch = 0 : i64, scratch_operands = 0 : i64, tpu.core_type = #tpu.core_type<tc>, window_params = [{transform_indices = @transform_0, window_bounds = array<i64: 16, 32>}, {pipeline_mode = #tpu.pipeline_mode<synchronous>, transform_indices = @transform_1, window_bounds = array<i64: 32, 32>}, {pipeline_mode = #tpu.pipeline_mode<synchronous>, transform_indices = @transform_2, window_bounds = array<i64: 32, 32>}, {pipeline_mode = #tpu.pipeline_mode<synchronous>, transform_indices = @transform_3, window_bounds = array<i64: 32, 32>}, {pipeline_mode = #tpu.pipeline_mode<synchronous>, transform_indices = @transform_4, window_bounds = array<i64: 1, 32>}, {pipeline_mode = #tpu.pipeline_mode<synchronous>, transform_indices = @transform_5, window_bounds = array<i64: 1, 32>}, {pipeline_mode = #tpu.pipeline_mode<synchronous>, transform_indices = @transform_6, window_bounds = array<i64: 1, 32>}, {transform_indices = @transform_7, window_bounds = array<i64: 16, 32>}, {transform_indices = @transform_8, window_bounds = array<i64: 16, 32>}, {transform_indices = @transform_9, window_bounds = array<i64: 16, 32>}]} {
    %c0 = arith.constant 0 : index
    %c0_0 = arith.constant 0 : index
    %0 = vector.load %arg1[%c0, %c0_0] : memref<16x32xbf16, #tpu.memory_space<vmem>>, vector<16x32xbf16>
    %c0_1 = arith.constant 0 : index
    %c0_2 = arith.constant 0 : index
    %1 = vector.load %arg2[%c0_1, %c0_2] : memref<32x32xbf16, #tpu.memory_space<vmem>>, vector<32x32xbf16>
    %cst = arith.constant dense<0.000000e+00> : vector<16x32xf32>
    %2 = tpu.matmul %0, %1, %cst {dimension_numbers = #tpu.dot_dimension_numbers<[1], [0], [0], [1], [0, 0, 1, 1], [], []>} : vector<16x32xbf16>, vector<32x32xbf16>, vector<16x32xf32> -> vector<16x32xf32>
    %c0_3 = arith.constant 0 : index
    %c0_4 = arith.constant 0 : index
    %3 = vector.load %arg5[%c0_3, %c0_4] : memref<1x32xf32, #tpu.memory_space<vmem>>, vector<1x32xf32>
    %4 = vector.broadcast %3 : vector<1x32xf32> to vector<16x32xf32>
    %5 = arith.addf %2, %4 : vector<16x32xf32>
    %6 = arith.truncf %5 : vector<16x32xf32> to vector<16x32xbf16>
    %c0_5 = arith.constant 0 : index
    %c0_6 = arith.constant 0 : index
    %7 = vector.load %arg8[%c0_5, %c0_6] : memref<16x32xbf16, #tpu.memory_space<vmem>>, vector<16x32xbf16>
    tpu.vector_store %arg8[%c0_5, %c0_6], %6 {strides = array<i32>} : memref<16x32xbf16, #tpu.memory_space<vmem>>, vector<16x32xbf16>,
    %c0_7 = arith.constant 0 : index
    %c0_8 = arith.constant 0 : index
    %8 = vector.load %arg3[%c0_7, %c0_8] : memref<32x32xbf16, #tpu.memory_space<vmem>>, vector<32x32xbf16>
    %cst_9 = arith.constant dense<0.000000e+00> : vector<16x32xf32>
    %9 = tpu.matmul %0, %8, %cst_9 {dimension_numbers = #tpu.dot_dimension_numbers<[1], [0], [0], [1], [0, 0, 1, 1], [], []>} : vector<16x32xbf16>, vector<32x32xbf16>, vector<16x32xf32> -> vector<16x32xf32>
    %c0_10 = arith.constant 0 : index
    %c0_11 = arith.constant 0 : index
    %10 = vector.load %arg6[%c0_10, %c0_11] : memref<1x32xf32, #tpu.memory_space<vmem>>, vector<1x32xf32>
    %11 = vector.broadcast %10 : vector<1x32xf32> to vector<16x32xf32>
    %12 = arith.addf %9, %11 : vector<16x32xf32>
    %13 = arith.truncf %12 : vector<16x32xf32> to vector<16x32xbf16>
    %c0_12 = arith.constant 0 : index
    %c0_13 = arith.constant 0 : index
    %14 = vector.load %arg9[%c0_12, %c0_13] : memref<16x32xbf16, #tpu.memory_space<vmem>>, vector<16x32xbf16>
    tpu.vector_store %arg9[%c0_12, %c0_13], %13 {strides = array<i32>} : memref<16x32xbf16, #tpu.memory_space<vmem>>, vector<16x32xbf16>,
    %c0_14 = arith.constant 0 : index
    %c0_15 = arith.constant 0 : index
    %15 = vector.load %arg4[%c0_14, %c0_15] : memref<32x32xbf16, #tpu.memory_space<vmem>>, vector<32x32xbf16>
    %cst_16 = arith.constant dense<0.000000e+00> : vector<16x32xf32>
    %16 = tpu.matmul %0, %15, %cst_16 {dimension_numbers = #tpu.dot_dimension_numbers<[1], [0], [0], [1], [0, 0, 1, 1], [], []>} : vector<16x32xbf16>, vector<32x32xbf16>, vector<16x32xf32> -> vector<16x32xf32>
    %c0_17 = arith.constant 0 : index
    %c0_18 = arith.constant 0 : index
    %17 = vector.load %arg7[%c0_17, %c0_18] : memref<1x32xf32, #tpu.memory_space<vmem>>, vector<1x32xf32>
    %18 = vector.broadcast %17 : vector<1x32xf32> to vector<16x32xf32>
    %19 = arith.addf %16, %18 : vector<16x32xf32>
    %20 = arith.truncf %19 : vector<16x32xf32> to vector<16x32xbf16>
    %c0_19 = arith.constant 0 : index
    %c0_20 = arith.constant 0 : index
    %21 = vector.load %arg10[%c0_19, %c0_20] : memref<16x32xbf16, #tpu.memory_space<vmem>>, vector<16x32xbf16>
    tpu.vector_store %arg10[%c0_19, %c0_20], %20 {strides = array<i32>} : memref<16x32xbf16, #tpu.memory_space<vmem>>, vector<16x32xbf16>,
    return
  }
  func.func @transform_0(%arg0: i32) -> (i32, i32) {
    %c0_i32 = arith.constant 0 : i32
    %c0_i32_0 = arith.constant 0 : i32
    return %arg0, %c0_i32 : i32, i32
  }
  func.func @transform_1(%arg0: i32) -> (i32, i32) {
    %c0_i32 = arith.constant 0 : i32
    %c0_i32_0 = arith.constant 0 : i32
    %c0_i32_1 = arith.constant 0 : i32
    return %c0_i32, %c0_i32_0 : i32, i32
  }
  func.func @transform_2(%arg0: i32) -> (i32, i32) {
    %c0_i32 = arith.constant 0 : i32
    %c0_i32_0 = arith.constant 0 : i32
    %c0_i32_1 = arith.constant 0 : i32
    return %c0_i32, %c0_i32_0 : i32, i32
  }
  func.func @transform_3(%arg0: i32) -> (i32, i32) {
    %c0_i32 = arith.constant 0 : i32
    %c0_i32_0 = arith.constant 0 : i32
    %c0_i32_1 = arith.constant 0 : i32
    return %c0_i32, %c0_i32_0 : i32, i32
  }
  func.func @transform_4(%arg0: i32) -> (i32, i32) {
    %c0_i32 = arith.constant 0 : i32
    %c0_i32_0 = arith.constant 0 : i32
    %c0_i32_1 = arith.constant 0 : i32
    return %c0_i32, %c0_i32_0 : i32, i32
  }
  func.func @transform_5(%arg0: i32) -> (i32, i32) {
    %c0_i32 = arith.constant 0 : i32
    %c0_i32_0 = arith.constant 0 : i32
    %c0_i32_1 = arith.constant 0 : i32
    return %c0_i32, %c0_i32_0 : i32, i32
  }
  func.func @transform_6(%arg0: i32) -> (i32, i32) {
    %c0_i32 = arith.constant 0 : i32
    %c0_i32_0 = arith.constant 0 : i32
    %c0_i32_1 = arith.constant 0 : i32
    return %c0_i32, %c0_i32_0 : i32, i32
  }
  func.func @transform_7(%arg0: i32) -> (i32, i32) {
    %c0_i32 = arith.constant 0 : i32
    %c0_i32_0 = arith.constant 0 : i32
    return %arg0, %c0_i32 : i32, i32
  }
  func.func @transform_8(%arg0: i32) -> (i32, i32) {
    %c0_i32 = arith.constant 0 : i32
    %c0_i32_0 = arith.constant 0 : i32
    return %arg0, %c0_i32 : i32, i32
  }
  func.func @transform_9(%arg0: i32) -> (i32, i32) {
    %c0_i32 = arith.constant 0 : i32
    %c0_i32_0 = arith.constant 0 : i32
    return %arg0, %c0_i32 : i32, i32
  }
}

module attributes {stable_mosaic.version = 11 : i64} {
  func.func @_ffn_add_ln_kernel(%arg0: i32, %arg1: memref<16x32xbf16, #tpu.memory_space<vmem>>, %arg2: memref<32x64xbf16, #tpu.memory_space<vmem>>, %arg3: memref<1x64xf32, #tpu.memory_space<vmem>>, %arg4: memref<64x32xbf16, #tpu.memory_space<vmem>>, %arg5: memref<1x32xf32, #tpu.memory_space<vmem>>, %arg6: memref<1x32xf32, #tpu.memory_space<vmem>>, %arg7: memref<1x32xf32, #tpu.memory_space<vmem>>, %arg8: memref<16x32xbf16, #tpu.memory_space<vmem>>) attributes {dimension_semantics = [#tpu.dimension_semantics<parallel>], iteration_bounds = array<i64: 1>, scalar_prefetch = 0 : i64, scratch_operands = 0 : i64, tpu.core_type = #tpu.core_type<tc>, window_params = [{transform_indices = @transform_0, window_bounds = array<i64: 16, 32>}, {pipeline_mode = #tpu.pipeline_mode<synchronous>, transform_indices = @transform_1, window_bounds = array<i64: 32, 64>}, {pipeline_mode = #tpu.pipeline_mode<synchronous>, transform_indices = @transform_2, window_bounds = array<i64: 1, 64>}, {pipeline_mode = #tpu.pipeline_mode<synchronous>, transform_indices = @transform_3, window_bounds = array<i64: 64, 32>}, {pipeline_mode = #tpu.pipeline_mode<synchronous>, transform_indices = @transform_4, window_bounds = array<i64: 1, 32>}, {pipeline_mode = #tpu.pipeline_mode<synchronous>, transform_indices = @transform_5, window_bounds = array<i64: 1, 32>}, {pipeline_mode = #tpu.pipeline_mode<synchronous>, transform_indices = @transform_6, window_bounds = array<i64: 1, 32>}, {transform_indices = @transform_7, window_bounds = array<i64: 16, 32>}]} {
    %c0 = arith.constant 0 : index
    %c0_0 = arith.constant 0 : index
    %0 = vector.load %arg1[%c0, %c0_0] : memref<16x32xbf16, #tpu.memory_space<vmem>>, vector<16x32xbf16>
    %c0_1 = arith.constant 0 : index
    %c0_2 = arith.constant 0 : index
    %1 = vector.load %arg2[%c0_1, %c0_2] : memref<32x64xbf16, #tpu.memory_space<vmem>>, vector<32x64xbf16>
    %cst = arith.constant dense<0.000000e+00> : vector<16x64xf32>
    %2 = tpu.matmul %0, %1, %cst {dimension_numbers = #tpu.dot_dimension_numbers<[1], [0], [0], [1], [0, 0, 1, 1], [], []>} : vector<16x32xbf16>, vector<32x64xbf16>, vector<16x64xf32> -> vector<16x64xf32>
    %c0_3 = arith.constant 0 : index
    %c0_4 = arith.constant 0 : index
    %3 = vector.load %arg3[%c0_3, %c0_4] : memref<1x64xf32, #tpu.memory_space<vmem>>, vector<1x64xf32>
    %4 = vector.broadcast %3 : vector<1x64xf32> to vector<16x64xf32>
    %5 = arith.addf %2, %4 : vector<16x64xf32>
    %cst_5 = arith.constant 5.000000e-01 : f32
    %6 = vector.broadcast %cst_5 : f32 to vector<16x64xf32>
    %7 = arith.mulf %6, %5 : vector<16x64xf32>
    %cst_6 = arith.constant 4.471500e-02 : f32
    %8 = vector.broadcast %cst_6 : f32 to vector<16x64xf32>
    %9 = arith.mulf %8, %5 : vector<16x64xf32>
    %10 = arith.mulf %9, %5 : vector<16x64xf32>
    %11 = arith.mulf %10, %5 : vector<16x64xf32>
    %12 = arith.addf %5, %11 : vector<16x64xf32>
    %cst_7 = arith.constant 0.797884583 : f32
    %13 = vector.broadcast %cst_7 : f32 to vector<16x64xf32>
    %14 = arith.mulf %13, %12 : vector<16x64xf32>
    %15 = math.tanh %14 : vector<16x64xf32>
    %cst_8 = arith.constant 1.000000e+00 : f32
    %16 = vector.broadcast %cst_8 : f32 to vector<16x64xf32>
    %17 = arith.addf %16, %15 : vector<16x64xf32>
    %18 = arith.mulf %7, %17 : vector<16x64xf32>
    %19 = arith.truncf %18 : vector<16x64xf32> to vector<16x64xbf16>
    %c0_9 = arith.constant 0 : index
    %c0_10 = arith.constant 0 : index
    %20 = vector.load %arg4[%c0_9, %c0_10] : memref<64x32xbf16, #tpu.memory_space<vmem>>, vector<64x32xbf16>
    %cst_11 = arith.constant dense<0.000000e+00> : vector<16x32xf32>
    %21 = tpu.matmul %19, %20, %cst_11 {dimension_numbers = #tpu.dot_dimension_numbers<[1], [0], [0], [1], [0, 0, 1, 1], [], []>} : vector<16x64xbf16>, vector<64x32xbf16>, vector<16x32xf32> -> vector<16x32xf32>
    %c0_12 = arith.constant 0 : index
    %c0_13 = arith.constant 0 : index
    %22 = vector.load %arg5[%c0_12, %c0_13] : memref<1x32xf32, #tpu.memory_space<vmem>>, vector<1x32xf32>
    %23 = vector.broadcast %22 : vector<1x32xf32> to vector<16x32xf32>
    %24 = arith.addf %21, %23 : vector<16x32xf32>
    %25 = arith.extf %0 : vector<16x32xbf16> to vector<16x32xf32>
    %26 = arith.addf %24, %25 : vector<16x32xf32>
    %cst_14 = arith.constant dense<0.000000e+00> : vector<16xf32>
    %27 = vector.multi_reduction <add>, %26, %cst_14 [1] : vector<16x32xf32> to vector<16xf32>
    %28 = vector.shape_cast %27 : vector<16xf32> to vector<16x1xf32>
    %cst_15 = arith.constant 3.200000e+01 : f32
    %29 = vector.broadcast %cst_15 : f32 to vector<16x1xf32>
    %30 = arith.divf %28, %29 : vector<16x1xf32>
    %31 = vector.broadcast %30 : vector<16x1xf32> to vector<16x32xf32>
    %32 = arith.subf %26, %31 : vector<16x32xf32>
    %33 = arith.mulf %32, %32 : vector<16x32xf32>
    %cst_16 = arith.constant dense<0.000000e+00> : vector<16xf32>
    %34 = vector.multi_reduction <add>, %33, %cst_16 [1] : vector<16x32xf32> to vector<16xf32>
    %35 = vector.shape_cast %34 : vector<16xf32> to vector<16x1xf32>
    %cst_17 = arith.constant 3.200000e+01 : f32
    %36 = vector.broadcast %cst_17 : f32 to vector<16x1xf32>
    %37 = arith.divf %35, %36 : vector<16x1xf32>
    %38 = vector.broadcast %30 : vector<16x1xf32> to vector<16x32xf32>
    %39 = arith.subf %26, %38 : vector<16x32xf32>
    %cst_18 = arith.constant 9.99999996E-13 : f32
    %40 = vector.broadcast %cst_18 : f32 to vector<16x1xf32>
    %41 = arith.addf %37, %40 : vector<16x1xf32>
    %42 = math.rsqrt %41 : vector<16x1xf32>
    %43 = vector.broadcast %42 : vector<16x1xf32> to vector<16x32xf32>
    %44 = arith.mulf %39, %43 : vector<16x32xf32>
    %c0_19 = arith.constant 0 : index
    %c0_20 = arith.constant 0 : index
    %45 = vector.load %arg6[%c0_19, %c0_20] : memref<1x32xf32, #tpu.memory_space<vmem>>, vector<1x32xf32>
    %46 = vector.broadcast %45 : vector<1x32xf32> to vector<16x32xf32>
    %47 = arith.mulf %44, %46 : vector<16x32xf32>
    %c0_21 = arith.constant 0 : index
    %c0_22 = arith.constant 0 : index
    %48 = vector.load %arg7[%c0_21, %c0_22] : memref<1x32xf32, #tpu.memory_space<vmem>>, vector<1x32xf32>
    %49 = vector.broadcast %48 : vector<1x32xf32> to vector<16x32xf32>
    %50 = arith.addf %47, %49 : vector<16x32xf32>
    %51 = arith.truncf %50 : vector<16x32xf32> to vector<16x32xbf16>
    %c0_23 = arith.constant 0 : index
    %c0_24 = arith.constant 0 : index
    %52 = vector.load %arg8[%c0_23, %c0_24] : memref<16x32xbf16, #tpu.memory_space<vmem>>, vector<16x32xbf16>
    tpu.vector_store %arg8[%c0_23, %c0_24], %51 {strides = array<i32>} : memref<16x32xbf16, #tpu.memory_space<vmem>>, vector<16x32xbf16>,
    return
  }
  func.func @transform_0(%arg0: i32) -> (i32, i32) {
    %c0_i32 = arith.constant 0 : i32
    %c0_i32_0 = arith.constant 0 : i32
    return %arg0, %c0_i32 : i32, i32
  }
  func.func @transform_1(%arg0: i32) -> (i32, i32) {
    %c0_i32 = arith.constant 0 : i32
    %c0_i32_0 = arith.constant 0 : i32
    %c0_i32_1 = arith.constant 0 : i32
    return %c0_i32, %c0_i32_0 : i32, i32
  }
  func.func @transform_2(%arg0: i32) -> (i32, i32) {
    %c0_i32 = arith.constant 0 : i32
    %c0_i32_0 = arith.constant 0 : i32
    %c0_i32_1 = arith.constant 0 : i32
    return %c0_i32, %c0_i32_0 : i32, i32
  }
  func.func @transform_3(%arg0: i32) -> (i32, i32) {
    %c0_i32 = arith.constant 0 : i32
    %c0_i32_0 = arith.constant 0 : i32
    %c0_i32_1 = arith.constant 0 : i32
    return %c0_i32, %c0_i32_0 : i32, i32
  }
  func.func @transform_4(%arg0: i32) -> (i32, i32) {
    %c0_i32 = arith.constant 0 : i32
    %c0_i32_0 = arith.constant 0 : i32
    %c0_i32_1 = arith.constant 0 : i32
    return %c0_i32, %c0_i32_0 : i32, i32
  }
  func.func @transform_5(%arg0: i32) -> (i32, i32) {
    %c0_i32 = arith.constant 0 : i32
    %c0_i32_0 = arith.constant 0 : i32
    %c0_i32_1 = arith.constant 0 : i32
    return %c0_i32, %c0_i32_0 : i32, i32
  }
  func.func @transform_6(%arg0: i32) -> (i32, i32) {
    %c0_i32 = arith.constant 0 : i32
    %c0_i32_0 = arith.constant 0 : i32
    %c0_i32_1 = arith.constant 0 : i32
    return %c0_i32, %c0_i32_0 : i32, i32
  }
  func.func @transform_7(%arg0: i32) -> (i32, i32) {
    %c0_i32 = arith.constant 0 : i32
    %c0_i32_0 = arith.constant 0 : i32
    return %arg0, %c0_i32 : i32, i32
  }
}

module attributes {stable_mosaic.version = 11 : i64} {
  func.func @_head_kernel(%arg0: memref<2x32xbf16, #tpu.memory_space<vmem>>, %arg1: memref<32x32xbf16, #tpu.memory_space<vmem>>, %arg2: memref<1x32xf32, #tpu.memory_space<vmem>>, %arg3: memref<32x2xbf16, #tpu.memory_space<vmem>>, %arg4: memref<1x2xf32, #tpu.memory_space<vmem>>, %arg5: memref<2x2xf32, #tpu.memory_space<vmem>>) attributes {dimension_semantics = [], scalar_prefetch = 0 : i64, scratch_operands = 0 : i64, tpu.core_type = #tpu.core_type<tc>} {
    %c0 = arith.constant 0 : index
    %c0_0 = arith.constant 0 : index
    %0 = vector.load %arg0[%c0, %c0_0] : memref<2x32xbf16, #tpu.memory_space<vmem>>, vector<2x32xbf16>
    %1 = arith.extf %0 : vector<2x32xbf16> to vector<2x32xf32>
    %2 = arith.truncf %1 : vector<2x32xf32> to vector<2x32xbf16>
    %c0_1 = arith.constant 0 : index
    %c0_2 = arith.constant 0 : index
    %3 = vector.load %arg1[%c0_1, %c0_2] : memref<32x32xbf16, #tpu.memory_space<vmem>>, vector<32x32xbf16>
    %cst = arith.constant dense<0.000000e+00> : vector<2x32xf32>
    %4 = tpu.matmul %2, %3, %cst {dimension_numbers = #tpu.dot_dimension_numbers<[1], [0], [0], [1], [0, 0, 1, 1], [], []>} : vector<2x32xbf16>, vector<32x32xbf16>, vector<2x32xf32> -> vector<2x32xf32>
    %c0_3 = arith.constant 0 : index
    %c0_4 = arith.constant 0 : index
    %5 = vector.load %arg2[%c0_3, %c0_4] : memref<1x32xf32, #tpu.memory_space<vmem>>, vector<1x32xf32>
    %6 = vector.broadcast %5 : vector<1x32xf32> to vector<2x32xf32>
    %7 = arith.addf %4, %6 : vector<2x32xf32>
    %cst_5 = arith.constant 5.000000e-01 : f32
    %8 = vector.broadcast %cst_5 : f32 to vector<2x32xf32>
    %9 = arith.mulf %8, %7 : vector<2x32xf32>
    %cst_6 = arith.constant 4.471500e-02 : f32
    %10 = vector.broadcast %cst_6 : f32 to vector<2x32xf32>
    %11 = arith.mulf %10, %7 : vector<2x32xf32>
    %12 = arith.mulf %11, %7 : vector<2x32xf32>
    %13 = arith.mulf %12, %7 : vector<2x32xf32>
    %14 = arith.addf %7, %13 : vector<2x32xf32>
    %cst_7 = arith.constant 0.797884583 : f32
    %15 = vector.broadcast %cst_7 : f32 to vector<2x32xf32>
    %16 = arith.mulf %15, %14 : vector<2x32xf32>
    %17 = math.tanh %16 : vector<2x32xf32>
    %cst_8 = arith.constant 1.000000e+00 : f32
    %18 = vector.broadcast %cst_8 : f32 to vector<2x32xf32>
    %19 = arith.addf %18, %17 : vector<2x32xf32>
    %20 = arith.mulf %9, %19 : vector<2x32xf32>
    %21 = arith.truncf %20 : vector<2x32xf32> to vector<2x32xbf16>
    %c0_9 = arith.constant 0 : index
    %c0_10 = arith.constant 0 : index
    %22 = vector.load %arg1[%c0_9, %c0_10] : memref<32x32xbf16, #tpu.memory_space<vmem>>, vector<32x32xbf16>
    %cst_11 = arith.constant dense<0.000000e+00> : vector<2x32xf32>
    %23 = tpu.matmul %21, %22, %cst_11 {dimension_numbers = #tpu.dot_dimension_numbers<[1], [0], [0], [1], [0, 0, 1, 1], [], []>} : vector<2x32xbf16>, vector<32x32xbf16>, vector<2x32xf32> -> vector<2x32xf32>
    %c0_12 = arith.constant 0 : index
    %c0_13 = arith.constant 0 : index
    %24 = vector.load %arg2[%c0_12, %c0_13] : memref<1x32xf32, #tpu.memory_space<vmem>>, vector<1x32xf32>
    %25 = vector.broadcast %24 : vector<1x32xf32> to vector<2x32xf32>
    %26 = arith.addf %23, %25 : vector<2x32xf32>
    %cst_14 = arith.constant 5.000000e-01 : f32
    %27 = vector.broadcast %cst_14 : f32 to vector<2x32xf32>
    %28 = arith.mulf %27, %26 : vector<2x32xf32>
    %cst_15 = arith.constant 4.471500e-02 : f32
    %29 = vector.broadcast %cst_15 : f32 to vector<2x32xf32>
    %30 = arith.mulf %29, %26 : vector<2x32xf32>
    %31 = arith.mulf %30, %26 : vector<2x32xf32>
    %32 = arith.mulf %31, %26 : vector<2x32xf32>
    %33 = arith.addf %26, %32 : vector<2x32xf32>
    %cst_16 = arith.constant 0.797884583 : f32
    %34 = vector.broadcast %cst_16 : f32 to vector<2x32xf32>
    %35 = arith.mulf %34, %33 : vector<2x32xf32>
    %36 = math.tanh %35 : vector<2x32xf32>
    %cst_17 = arith.constant 1.000000e+00 : f32
    %37 = vector.broadcast %cst_17 : f32 to vector<2x32xf32>
    %38 = arith.addf %37, %36 : vector<2x32xf32>
    %39 = arith.mulf %28, %38 : vector<2x32xf32>
    %40 = arith.truncf %39 : vector<2x32xf32> to vector<2x32xbf16>
    %c0_18 = arith.constant 0 : index
    %c0_19 = arith.constant 0 : index
    %41 = vector.load %arg1[%c0_18, %c0_19] : memref<32x32xbf16, #tpu.memory_space<vmem>>, vector<32x32xbf16>
    %cst_20 = arith.constant dense<0.000000e+00> : vector<2x32xf32>
    %42 = tpu.matmul %40, %41, %cst_20 {dimension_numbers = #tpu.dot_dimension_numbers<[1], [0], [0], [1], [0, 0, 1, 1], [], []>} : vector<2x32xbf16>, vector<32x32xbf16>, vector<2x32xf32> -> vector<2x32xf32>
    %c0_21 = arith.constant 0 : index
    %c0_22 = arith.constant 0 : index
    %43 = vector.load %arg2[%c0_21, %c0_22] : memref<1x32xf32, #tpu.memory_space<vmem>>, vector<1x32xf32>
    %44 = vector.broadcast %43 : vector<1x32xf32> to vector<2x32xf32>
    %45 = arith.addf %42, %44 : vector<2x32xf32>
    %cst_23 = arith.constant 5.000000e-01 : f32
    %46 = vector.broadcast %cst_23 : f32 to vector<2x32xf32>
    %47 = arith.mulf %46, %45 : vector<2x32xf32>
    %cst_24 = arith.constant 4.471500e-02 : f32
    %48 = vector.broadcast %cst_24 : f32 to vector<2x32xf32>
    %49 = arith.mulf %48, %45 : vector<2x32xf32>
    %50 = arith.mulf %49, %45 : vector<2x32xf32>
    %51 = arith.mulf %50, %45 : vector<2x32xf32>
    %52 = arith.addf %45, %51 : vector<2x32xf32>
    %cst_25 = arith.constant 0.797884583 : f32
    %53 = vector.broadcast %cst_25 : f32 to vector<2x32xf32>
    %54 = arith.mulf %53, %52 : vector<2x32xf32>
    %55 = math.tanh %54 : vector<2x32xf32>
    %cst_26 = arith.constant 1.000000e+00 : f32
    %56 = vector.broadcast %cst_26 : f32 to vector<2x32xf32>
    %57 = arith.addf %56, %55 : vector<2x32xf32>
    %58 = arith.mulf %47, %57 : vector<2x32xf32>
    %59 = arith.truncf %58 : vector<2x32xf32> to vector<2x32xbf16>
    %c0_27 = arith.constant 0 : index
    %c0_28 = arith.constant 0 : index
    %60 = vector.load %arg3[%c0_27, %c0_28] : memref<32x2xbf16, #tpu.memory_space<vmem>>, vector<32x2xbf16>
    %cst_29 = arith.constant dense<0.000000e+00> : vector<2x2xf32>
    %61 = tpu.matmul %59, %60, %cst_29 {dimension_numbers = #tpu.dot_dimension_numbers<[1], [0], [0], [1], [0, 0, 1, 1], [], []>} : vector<2x32xbf16>, vector<32x2xbf16>, vector<2x2xf32> -> vector<2x2xf32>
    %c0_30 = arith.constant 0 : index
    %c0_31 = arith.constant 0 : index
    %62 = vector.load %arg4[%c0_30, %c0_31] : memref<1x2xf32, #tpu.memory_space<vmem>>, vector<1x2xf32>
    %63 = vector.broadcast %62 : vector<1x2xf32> to vector<2x2xf32>
    %64 = arith.addf %61, %63 : vector<2x2xf32>
    %c0_32 = arith.constant 0 : index
    %c0_33 = arith.constant 0 : index
    %65 = vector.load %arg5[%c0_32, %c0_33] : memref<2x2xf32, #tpu.memory_space<vmem>>, vector<2x2xf32>
    tpu.vector_store %arg5[%c0_32, %c0_33], %64 {strides = array<i32>} : memref<2x2xf32, #tpu.memory_space<vmem>>, vector<2x2xf32>,
    return
  }
}

</mosaic_0001>

<bundles_post_ra>
// kernel: tpu_custom_call.1
= control target key start
LH: loop header
LB: loop body
LE: loop exit
PB: predicated region body
PF: predicated region fallthrough
CT: control target
= control target key end

     0   :  { %7 = vsyncpa [#allocation3], 0  ;;  %s690_s0 = inlined_call_operand.hbm [shape: f32[16,128], index: 0, kind: input, shape index: {}]   ;;  %s691_s1 = inlined_call_operand.hbm [shape: f32[8,128], index: 1, kind: input, shape index: {}]   ;;  %s692_s2 = inlined_call_operand.hbm [shape: f32[16,128], index: 2, kind: output, shape index: {}]  }
   0x1   :  { %9 = vsyncpa [#allocation3 + $0x1], 0 }
   0x2   :  { %10 = vsyncpa [#allocation6], 0 }
   0x3   :  { %11 = vsyncpa [#allocation4], 0 }
   0x4   :  { %13 = vsyncpa [#allocation4 + $0x1], 0  ;;  %s489_s9 = smov 0   ;;  %s491_s10 = smov 0  }
   0x5   :  { %s493_s11 = smov 0   ;;  %s495_s12 = smov 0  }
   0x6 LB: > { %s510_s13 = sadd.s32 4294967295, %s469_s12   ;;  %s270_s14 = sadd.s32 4294967294, %s469_s12   ;;  %s469_s12 = sphi %s495_s12, %s716_s12   ;;  %s465_s11 = sphi %s493_s11, %s715_s11   ;;  %s461_s10 = sphi %s491_s10, %s714_s10   ;;  %s457_s9 = sphi %s489_s9, %s713_s9  }
   0x7   : > { %p39_p0 = scmp.ne.s32.totalorder %s461_s10, %s457_s9  ;;  %p693_p1 = scmp.eq.s32.totalorder %s510_s13, 0 }
   0x8   : > { %p90_p3 = scmp.eq.s32.totalorder %s270_s14, 1  ;;  %p271_p5 = scmp.ge.s32.totalorder %s469_s12, 1 }
   0x9   : > { %p519_p4 = por %p693_p1, %p39_p0  ;;  %p97_p7 = scmp.lt.s32.totalorder %s469_s12, 3 }
   0xa   : > { %p524_p6 = por %p90_p3, %p39_p0  ;;  %s471_s18 = smov [#allocation5]  }
   0xb   : > { %s696_s15 = scalar_select %p519_p4, 1, 0 }
   0xc   : > { %s697_s16 = scalar_select %p524_p6, 1, 0 }
   0xd   : > { %p529_p8 = pnand %p271_p5, %p97_p7  ;;  %s110_s19 = sshll.u32 %s471_s18, 4  ;;  %s111_s19 = int_to_ptr.vmem [resolvable:$true] %s110_s19 }
   0xe   : > { %s537_s20 = sadd.s32 1, %s469_s12   ;;  %s26_s24 = sadd.s32 1, %s465_s11 }
   0xf   : > { %s698_s17 = scalar_select %p529_p8, 1, 0 }
  0x10   : > { %p292_p10 = pneg %p529_p8  ;;  %s23_s22 = ssub.s32 %s469_s12, %s537_s20 }
  0x11   : > { %p547_p12 = scmp.eq.s32.totalorder %s23_s22, 0  ;;  %s341_s27 = scalar_lea.hbm %s691_s1, 128 }
  0x12   : > { %p541_p11 = pnand %p292_p10, %p693_p1  ;;  %p342_p0 = scmp.ne.s32.totalorder %s691_s1, %s341_s27 }
  0x13   : > { %s700_s23 = scalar_select %p547_p12, 1, 0 }
  0x14   : > { %p343_p3 = pneg %p541_p11  ;;  %p348_p10 = scmp.lt.u32.totalorder %s341_s27, %s691_s1 }
  0x16   : > { %p344_p5 = pnand %p343_p3, %p342_p0 }
  0x18   : > { %p345_p7 = pneg %p344_p5 }
  0x1a   : > { %p350_p9 = pnand %p348_p10, %p345_p7 }
  0x1c   : > { %353 = shalt.err (!%p350_p9)
}
  0x1d   : > { %s354_s4 = scalar_lea.vmem %s111_s19, 128  ;;  %p362_p6 = scmp.lt.s32.totalorder %s111_s19, %s111_s19 }
  0x1e   : > { %p355_p1 = scmp.ne.s32.totalorder %s111_s19, %s354_s4  ;;  %p363_p4 = scmp.lt.s32.totalorder %s354_s4, %s354_s4 }
  0x20   : > { %p357_p2 = pnand %p355_p1, %p343_p3  ;;  %p364_p8 = por %p363_p4, %p362_p6 }
  0x22   : > { %p358_p13 = pneg %p357_p2 }
  0x24   : > { %p365_p12 = pnand %p364_p8, %p358_p13 }
  0x26   : > { %368 = shalt.err (!%p365_p12)
}
  0x27   : > { %295 = dma.hbm_to_vmem [thread:$0]  (!%p541_p11), %s691_s1, 128, %s111_s19, [#allocation6]  }
  0x28   : > { %p701_p1 = scmp.ne.s32.totalorder %s700_s23, 0  ;;  %p34_p2 = scmp.eq.s32.totalorder %s469_s12, 0 }
  0x29   : > { %p702_p4 = scmp.ne.s32.totalorder %s465_s11, %s461_s10  ;;  %p703_p6 = scmp.eq.s32.totalorder %s510_s13, 1 }
  0x2a   : > { %s573_s7 = scalar_select %p701_p1, %s465_s11, %s26_s24  }
  0x2b   : > { %p581_p8 = por %p703_p6, %p702_p4  ;;  %p305_p9 = scmp.lt.s32.totalorder %s469_s12, 2 }
  0x2c   : > { %s121_s14 = sand.u32 1, %s465_s11   ;;  %p705_p12 = pmov %p702_p4 }
  0x2d   : > { %s274_s18 = sshll.u32 %s121_s14, 3  ;;  %s275_s21 = sshll.u32 %s469_s12, 7 }
  0x2e   : > { %p35_p13 = por %p34_p2, %p705_p12  ;;  %s594_s19 = scalar_lea.hbm %s690_s0, %s275_s21 }
  0x2f   : > { %s125_s23 = scalar_lea.vmem [#allocation2], %s274_s18  ;;  %s122_s27 = scalar_lea.sflag [#allocation3], %s121_s14 }
  0x30   : > { %s132_s24 = sshll.u32 %s125_s23, 4  ;;  %p596_p11 = pnand %p305_p9, %p35_p13  ;;  %s600_s24 = int_to_ptr.vmem [resolvable:$true] %s132_s24 }
  0x31   : > { %s369_s28 = scalar_lea.hbm %s594_s19, 128  ;;  %s374_s3 = scalar_lea.hbm %s690_s0, 256 }
  0x32   : > { %p370_p0 = scmp.ne.s32.totalorder %s594_s19, %s369_s28  ;;  %p371_p3 = pneg %p596_p11 }
  0x33   : > { %p375_p10 = scmp.lt.u32.totalorder %s594_s19, %s690_s0  ;;  %p376_p1 = scmp.lt.u32.totalorder %s374_s3, %s369_s28 }
  0x34   : > { %p372_p5 = pnand %p371_p3, %p370_p0  ;;  %p378_p4 = scmp.lt.u32.totalorder %s369_s28, %s594_s19 }
  0x35   : > { %p377_p2 = por %p376_p1, %p375_p10 }
  0x36   : > { %p373_p7 = pneg %p372_p5 }
  0x37   : > { %p379_p6 = por %p378_p4, %p377_p2 }
  0x39   : > { %p380_p9 = pnand %p379_p6, %p373_p7 }
  0x3b   : > { %383 = shalt.err (!%p380_p9)
}
  0x3c   : > { %s384_s6 = scalar_lea.vmem %s600_s24, 128  ;;  %s472_s14 = smov [#allocation2]  }
  0x3d   : > { %p385_p12 = scmp.ne.s32.totalorder %s600_s24, %s384_s6  ;;  %s389_s18 = sshll.u32 %s472_s14, 4  ;;  %s390_s18 = int_to_ptr.vmem [resolvable:$false] %s389_s18 }
  0x3e   : > { %s391_s21 = scalar_lea.vmem %s390_s18, 256  ;;  %p392_p5 = scmp.lt.s32.totalorder %s600_s24, %s390_s18 }
  0x3f   : > { %p387_p13 = pnand %p385_p12, %p371_p3  ;;  %p393_p10 = scmp.lt.s32.totalorder %s391_s21, %s384_s6 }
  0x41   : > { %p388_p0 = pneg %p387_p13  ;;  %p394_p1 = por %p393_p10, %p392_p5 }
  0x43   : > { %p395_p2 = pnand %p394_p1, %p388_p0 }
  0x45   : > { %398 = shalt.err (!%p395_p2)
}
  0x46   : > { %299 = dma.hbm_to_vmem [thread:$0]  (!%p596_p11), %s594_s19, 128, %s600_s24, %s122_s27  }
  0x47   : > { %p707_p7 = scmp.ne.s32.totalorder %s698_s17, 0 }
  0x48   : > { %s630_s22 = sand.u32 (!%p707_p7), 1, %s461_s10   ;;  %p708_p3 = scmp.ne.s32.totalorder (!%p707_p7), %s696_s15, 0 }
  0x49   : > { %141 = sbr.rel (%p707_p7) target bundleno = 109 (0x6d), region = 28  ;;  %s277_s25 = sshll.u32 (!%p707_p7), %s630_s22, 3 }
  0x4a   : > { %s144_s23 = scalar_lea.sflag (!%p707_p7), [#allocation3], %s630_s22  ;;  %s147_s28 = scalar_lea.vmem (!%p707_p7), [#allocation2], %s277_s25 }
  0x50   : > { %444 = dma.done.wait (%p708_p3), %s144_s23, 128  }
  0x51   : > { %446 = vsyncadd (%p708_p3), %s144_s23, 4294967168  ;;  %p709_p4 = scmp.eq.s32.totalorder %s510_s13, 0 }
  0x53   : > { %448 = dma.done.wait (%p709_p4), [#allocation6], 128   ;;  %p710_p11 = pmov %p709_p4 }
  0x54   : > { %s171_s17 = scalar_lea.vmem [#allocation7], %s277_s25  ;;  %s281_s24 = sshll.u32 %s510_s13, 7  ;;  %v172_v0 = vld [vmem:[%s147_s28] sm:$0xff]  ;;  %v173_v1 = vld [vmem:[#allocation5] sm:$0xff] }
  0x55   : > { %450 = vsyncadd (%p710_p11), [#allocation6], 4294967168  ;;  %s190_s19 = sshll.u32 %s171_s17, 4  ;;  %v174_v2 = vadd.f32 %v173_v1, %v172_v0  ;;  %s648_s27 = scalar_lea.hbm %s692_s2, %s281_s24  ;;  %s643_s19 = int_to_ptr.vmem [resolvable:$true] %s190_s19 }
  0x56   : > { %s177_s29 = scalar_lea.sflag [#allocation4], %s630_s22  ;;  %s399_s30 = scalar_lea.vmem %s643_s19, 128 }
  0x57   : > { %175 = vst [vmem:[%s171_s17] sm:$0xff] %v174_v2  ;;  %p400_p6 = scmp.ne.s32.totalorder %s643_s19, %s399_s30  ;;  %s473_s13 = smov [#allocation7]  }
  0x58   : > { %s403_s3 = sshll.u32 %s473_s13, 4  ;;  %s404_s3 = int_to_ptr.vmem [resolvable:$false] %s403_s3 }
  0x59   : > { %p401_p9 = pnand %p400_p6, %p581_p8  ;;  %s405_s4 = scalar_lea.vmem %s404_s3, 256 }
  0x5a   : > { %p406_p13 = scmp.lt.s32.totalorder %s643_s19, %s404_s3  ;;  %p407_p0 = scmp.lt.s32.totalorder %s405_s4, %s399_s30 }
  0x5b   : > { %p402_p12 = pneg %p401_p9 }
  0x5c   : > { %p408_p5 = por %p407_p0, %p406_p13 }
  0x5e   : > { %p409_p10 = pnand %p408_p5, %p402_p12 }
  0x60   : > { %412 = shalt.err (!%p409_p10)
}
  0x61   : > { %s413_s5 = scalar_lea.hbm %s648_s27, 128  ;;  %s417_s18 = scalar_lea.hbm %s692_s2, 256 }
  0x62   : > { %p414_p1 = scmp.ne.s32.totalorder %s648_s27, %s413_s5  ;;  %p418_p3 = scmp.lt.u32.totalorder %s648_s27, %s692_s2 }
  0x63   : > { %p419_p4 = scmp.lt.u32.totalorder %s417_s18, %s413_s5  ;;  %p421_p6 = scmp.lt.u32.totalorder %s413_s5, %s648_s27 }
  0x64   : > { %p415_p2 = pnand %p414_p1, %p581_p8 }
  0x65   : > { %p420_p11 = por %p419_p4, %p418_p3 }
  0x66   : > { %p416_p7 = pneg %p415_p2 }
  0x67   : > { %p422_p9 = por %p421_p6, %p420_p11 }
  0x69   : > { %p423_p12 = pnand %p422_p9, %p416_p7 }
  0x6b   : > { %426 = shalt.err (!%p423_p12)
}
  0x6c   : > { %290 = dma.vmem_to_hbm [thread:$0]  (%p581_p8), %s643_s19, 128, %s648_s27, %s177_s29  }
  0x6d PF: > { %s202_s25 = sand.u32 1, %s457_s9   ;;  %p711_p13 = scmp.ne.s32.totalorder %s697_s16, 0 }
  0x6e   : > { %p712_p0 = scmp.ge.s32.totalorder %s469_s12, 2  ;;  %s203_s23 = scalar_lea.sflag [#allocation4], %s202_s25 }
  0x70   : > { %p301_p5 = pnand %p712_p0, %p711_p13 }
  0x72   : > { %452 = dma.done.wait (!%p301_p5), %s203_s23, 128  }
  0x73   : > { %454 = vsyncadd (!%p301_p5), %s203_s23, 4294967168  ;;  %p16_p10 = scmp.ge.s32.totalorder %s537_s20, 4   ;;  %s713_s9 = smov %s461_s10 }
  0x74   : > { %s714_s10 = smov %s465_s11  ;;  %s715_s11 = smov %s573_s7 }
  0x75   : > { %s716_s12 = smov %s537_s20  ;;  %18 = sbr.rel (!%p16_p10) target bundleno = 6 (0x6), region = 77 }
  0x7c   :  { %208 = vsyncpa [#allocation3], 1 }
  0x7d   :  { %210 = vsyncpa [#allocation3 + $0x1], 1 }
  0x7e   :  { %211 = vsyncpa [#allocation6], 1 }
  0x7f   :  { %212 = vsyncpa [#allocation4], 1 }
  0x80   :  { %214 = vsyncpa [#allocation4 + $0x1], 1 }

// kernel: _lambda_.13
= control target key start
LH: loop header
LB: loop body
LE: loop exit
PB: predicated region body
PF: predicated region fallthrough
CT: control target
= control target key end

     0   :  { %v200_v0 = vmov 0.0   ;;  %vm201_vm0 = vmmov 0   ;;  %vm54_vm1 = vcmask 261120   ;;  %vm158_vm2 = vcmask 257024   ;;  %s269_s1 = inlined_call_operand.vmem [shape: bf16[32,32], index: 1, kind: input, shape index: {}]   ;;  %s270_s0 = inlined_call_operand.vmem [shape: bf16[16,32], index: 0, kind: input, shape index: {}]   ;;  %s271_s3 = inlined_call_operand.vmem [shape: bf16[16,32], index: 3, kind: input, shape index: {}]   ;;  %s272_s2 = inlined_call_operand.vmem [shape: f32[1,32], index: 2, kind: input, shape index: {}]   ;;  %s273_s4 = inlined_call_operand.vmem [shape: f32[1,32], index: 4, kind: input, shape index: {}]   ;;  %s274_s5 = inlined_call_operand.vmem [shape: f32[1,32], index: 5, kind: input, shape index: {}]   ;;  %s275_s6 = inlined_call_operand.vmem [shape: bf16[16,32], index: 6, kind: output, shape index: {}]  }
   0x1   :  { %183 = vmatprep.subr.bf16.mxu0 %v200_v0  ;;  %v193_v1 = vld [vmem:[%s269_s1] sm:$0xff]   ;;  %187 = vmatprep.mubr.msk.bf16.mxu0 %vm201_vm0, %v200_v0  ;;  %v194_v2 = vld [vmem:[%s269_s1 + $0x8] sm:$0xff]  }
   0x2   :  { %184 = vmatpush3.bf16.msra.mxu0 %v193_v1  ;;  %v195_v3 = vld [vmem:[%s270_s0] sm:$0xff]  }
   0x3   :  { %185 = vmatprep.subr.bf16.mxu0 %v200_v0  ;;  %v177_v4 = vld [vmem:[%s271_s3] sm:$0xff]  }
   0x4   :  { %v165_v5 = vld [vmem:[%s272_s2] ss:$0 sm:$0xff]  ;;  %v178_v6 = vunpack.c.l.bf16 %v177_v4  ;;  %v179_v10 = vunpack.c.h.bf16 %v177_v4 }
   0x5   :  { %v170_v35 = vld [vmem:[%s273_s4] ss:$0 sm:$0xff] }
   0x6   :  { %186 = vmatpush3.bf16.msra.mxu0 %v194_v2  ;;  %v171_v37 = vld [vmem:[%s274_s5] ss:$0 sm:$0xff] }
   0x9   :  { %188 = vmatmul.mubr.msk.bf16.vlgmr.msra.gmra.mrb[0].mxu0 %vm54_vm1, %v195_v3 }
  0xdc   :  { %v92_v7 = vpop.f32.mrb[0].mxu0 }
  0xdd   :  { %v93_v8 = vadd.f32 %v165_v5, %v92_v7  ;;  %v189_v9 = vpop.f32.mrb[1].mxu0 }
  0xde   :  { %v95_v11 = vpop.f32.mrb[2].mxu0 }
  0xdf   :  { %v96_v12 = vadd.f32 %v165_v5, %v95_v11  ;;  %v190_v13 = vpop.f32.mrb[3].mxu0  ;;  %v103_v14 = vadd.f32 %v178_v6, %v93_v8 }
  0xe1   :  { %v105_v15 = vsel %vm54_vm1, %v103_v14, 0.0  ;;  %v104_v16 = vadd.f32 %v179_v10, %v96_v12 }
  0xe2   :  { %106 = vadd.xlane.f32.xlu0 %v105_v15 }
  0xe3   :  { %v108_v17 = vsel %vm54_vm1, %v104_v16, 0.0 }
  0xe6   :  { %109 = vadd.xlane.f32.xlu0 %v108_v17 }
 0x16f   :  { %v107_v18 = vpop.xlane.xlu0 %106 }
 0x170   :  { %v112_v19 = vmul.f32 0.03125, %v107_v18 }
 0x172   :  { %v114_v20 = vsub.f32 %v103_v14, %v112_v19 }
 0x173   :  { %v110_v21 = vpop.xlane.xlu0 %109 }
 0x174   :  { %v113_v22 = vmul.f32 0.03125, %v110_v21  ;;  %v116_v23 = vmul.f32 %v114_v20, %v114_v20 }
 0x176   :  { %v115_v24 = vsub.f32 %v104_v16, %v113_v22  ;;  %v118_v25 = vsel %vm54_vm1, %v116_v23, 0.0 }
 0x177   :  { %119 = vadd.xlane.f32.xlu1 %v118_v25 }
 0x178   :  { %v117_v26 = vmul.f32 %v115_v24, %v115_v24 }
 0x17a   :  { %v121_v27 = vsel %vm54_vm1, %v117_v26, 0.0 }
 0x17b   :  { %122 = vadd.xlane.f32.xlu1 %v121_v27 }
 0x204   :  { %v120_v28 = vpop.xlane.xlu1 %119 }
 0x205   :  { %v124_v29 = vmul.f32 0.03125, %v120_v28 }
 0x207   :  { %v126_v30 = vadd.f32 1e-12, %v124_v29 }
 0x208   :  { %v123_v31 = vpop.xlane.xlu1 %122 }
 0x209   :  { %196 = vrsqrt.f32 %v126_v30  ;;  %v125_v32 = vmul.f32 0.03125, %v123_v31 }
 0x20b   :  { %v127_v33 = vadd.f32 1e-12, %v125_v32 }
 0x20d   :  { %198 = vrsqrt.f32 %v127_v33 }
 0x213   :  { %v197_v34 = vpop.eup %196 }
 0x214   :  { %v130_v36 = vmul.f32 %v197_v34, %v114_v20 }
 0x216   :  { %v139_v38 = vmul.f32 %v170_v35, %v130_v36 }
 0x217   :  { %v199_v39 = vpop.eup %198 }
 0x218   :  { %v148_v40 = vadd.f32 %v171_v37, %v139_v38  ;;  %v131_v41 = vmul.f32 %v199_v39, %v115_v24 }
 0x21a   :  { %v174_v42 = vpack.c.bf16 %v148_v40, %v148_v40  ;;  %v140_v43 = vmul.f32 %v170_v35, %v131_v41 }
 0x21c   :  { %159 = vst.msk [vmem:[%s275_s6] sm:$0xf] %vm158_vm2, %v174_v42  ;;  %v149_v44 = vadd.f32 %v171_v37, %v140_v43 }
 0x21e   :  { %v175_v45 = vpack.c.bf16 %v149_v44, %v149_v44 }
 0x220   :  { %160 = vst.msk [vmem:[%s275_s6 + $0x4] sm:$0xf] %vm158_vm2, %v175_v45 }

// kernel: _lambda_.10
= control target key start
LH: loop header
LB: loop body
LE: loop exit
PB: predicated region body
PF: predicated region fallthrough
CT: control target
= control target key end

     0   :  { %vm16_vm0 = vcmask 261120   ;;  %vm70_vm1 = vcmask 257024   ;;  %s129_s0 = inlined_call_operand.vmem [shape: f32[16,32], index: 0, kind: input, shape index: {}]   ;;  %s130_s1 = inlined_call_operand.vmem [shape: f32[1,32], index: 1, kind: input, shape index: {}]   ;;  %s131_s2 = inlined_call_operand.vmem [shape: f32[1,32], index: 2, kind: input, shape index: {}]   ;;  %s132_s3 = inlined_call_operand.vmem [shape: bf16[16,32], index: 3, kind: output, shape index: {}]  }
   0x1   :  { %v14_v0 = vld [vmem:[%s129_s0] sm:$0xff]  ;;  %v15_v1 = vld [vmem:[%s129_s0 + $0x8] sm:$0xff] }
   0x2   :  { %v17_v2 = vsel %vm16_vm0, %v14_v0, 0.0  ;;  %v20_v3 = vsel %vm16_vm0, %v15_v1, 0.0  ;;  %v77_v21 = vld [vmem:[%s130_s1] ss:$0 sm:$0xff] }
   0x3   :  { %18 = vadd.xlane.f32.xlu0 %v17_v2  ;;  %v78_v23 = vld [vmem:[%s131_s2] ss:$0 sm:$0xff] }
   0x7   :  { %21 = vadd.xlane.f32.xlu0 %v20_v3 }
  0x90   :  { %v19_v4 = vpop.xlane.xlu0 %18 }
  0x91   :  { %v24_v5 = vmul.f32 0.03125, %v19_v4 }
  0x93   :  { %v26_v6 = vsub.f32 %v14_v0, %v24_v5 }
  0x94   :  { %v22_v7 = vpop.xlane.xlu0 %21 }
  0x95   :  { %v25_v8 = vmul.f32 0.03125, %v22_v7  ;;  %v28_v9 = vmul.f32 %v26_v6, %v26_v6 }
  0x97   :  { %v27_v10 = vsub.f32 %v15_v1, %v25_v8  ;;  %v30_v11 = vsel %vm16_vm0, %v28_v9, 0.0 }
  0x98   :  { %31 = vadd.xlane.f32.xlu1 %v30_v11 }
  0x99   :  { %v29_v12 = vmul.f32 %v27_v10, %v27_v10 }
  0x9b   :  { %v33_v13 = vsel %vm16_vm0, %v29_v12, 0.0 }
  0x9c   :  { %34 = vadd.xlane.f32.xlu1 %v33_v13 }
 0x125   :  { %v32_v14 = vpop.xlane.xlu1 %31 }
 0x126   :  { %v36_v15 = vmul.f32 0.03125, %v32_v14 }
 0x128   :  { %v38_v16 = vadd.f32 1e-12, %v36_v15 }
 0x129   :  { %v35_v17 = vpop.xlane.xlu1 %34 }
 0x12a   :  { %83 = vrsqrt.f32 %v38_v16  ;;  %v37_v18 = vmul.f32 0.03125, %v35_v17 }
 0x12c   :  { %v39_v19 = vadd.f32 1e-12, %v37_v18 }
 0x12e   :  { %85 = vrsqrt.f32 %v39_v19 }
 0x134   :  { %v84_v20 = vpop.eup %83 }
 0x135   :  { %v42_v22 = vmul.f32 %v84_v20, %v26_v6 }
 0x137   :  { %v51_v24 = vmul.f32 %v77_v21, %v42_v22 }
 0x138   :  { %v86_v25 = vpop.eup %85 }
 0x139   :  { %v60_v26 = vadd.f32 %v78_v23, %v51_v24  ;;  %v43_v27 = vmul.f32 %v86_v25, %v27_v10 }
 0x13b   :  { %v81_v28 = vpack.c.bf16 %v60_v26, %v60_v26  ;;  %v52_v29 = vmul.f32 %v77_v21, %v43_v27 }
 0x13d   :  { %71 = vst.msk [vmem:[%s132_s3] sm:$0xf] %vm70_vm1, %v81_v28  ;;  %v61_v30 = vadd.f32 %v78_v23, %v52_v29 }
 0x13f   :  { %v82_v31 = vpack.c.bf16 %v61_v30, %v61_v30 }
 0x141   :  { %72 = vst.msk [vmem:[%s132_s3 + $0x4] sm:$0xf] %vm70_vm1, %v82_v31 }

// kernel: _lambda_.12
= control target key start
LH: loop header
LB: loop body
LE: loop exit
PB: predicated region body
PF: predicated region fallthrough
CT: control target
= control target key end

     0   :  { %s687_s15 = smov 0   ;;  %s739_s0 = inlined_call_operand.vmem [shape: bf16[16,32], index: 0, kind: input, shape index: {}]   ;;  %s740_s1 = inlined_call_operand.vmem [shape: bf16[16,32], index: 1, kind: input, shape index: {}]   ;;  %s741_s2 = inlined_call_operand.vmem [shape: bf16[16,32], index: 2, kind: input, shape index: {}]   ;;  %s742_s3 = inlined_call_operand.vmem [shape: f32[2,1,8], index: 3, kind: input, shape index: {}]   ;;  %s743_s4 = inlined_call_operand.vmem [shape: bf16[16,32], index: 4, kind: output, shape index: {}]  }
   0x1 LB: > { %s576_s16 = sadd.s32 4294967295, %s656_s15   ;;  %p580_p0 = scmp.ge.s32.totalorder %s656_s15, 1  ;;  %s656_s15 = sphi %s687_s15, %s14_s15  }
   0x2   : > { %p187_p1 = scmp.lt.s32.totalorder %s656_s15, 3 }
   0x4   : > { %p188_p2 = pnand %p580_p0, %p187_p1 }
   0x5   : > { %p222_p3 = scmp.lt.s32.totalorder (!%p188_p2), %s576_s16, 1  ;;  %v658_v0 = vmov (!%p188_p2), 0.0   ;;  %vm659_vm0 = vmmov (!%p188_p2), 0   ;;  %vm246_vm1 = vcmask (!%p188_p2), 130048   ;;  %vm301_vm2 = vcmask (!%p188_p2), 64512   ;;  %s660_s27 = smov (!%p188_p2), 112  }
   0x6   : > { %191 = sbr.rel (%p188_p2) target bundleno = 1428 (0x594), region = 36  ;;  %603 = vmatprep.subr.bf16.mxu0 (!%p188_p2), %v658_v0  ;;  %605 = vmatprep.mubr.msk.bf16.mxu0 (!%p188_p2), %vm659_vm0, %v658_v0  ;;  %vm317_vm3 = vcmask (!%p188_p2), 1043456   ;;  %s661_s5 = smov (!%p188_p2), 16   ;;  %vm488_vm4 = vcmask (!%p188_p2), 257024  }
   0x7   : > { %609 = vmatprep.subr.bf16.mxu1 (!%p188_p2), %v658_v0  ;;  %611 = vmatprep.mubr.msk.bf16.mxu1 (!%p188_p2), %vm659_vm0, %v658_v0 }
   0xd   : > { %s745_s16 = smov (!%p222_p3, %s576_s16), 1 }
   0xe   : > { %s697_s17 = sshll.u32 %s745_s16, 2  ;;  %s236_s26 = scalar_lea.vmem %s742_s3, %s745_s16 }
   0xf   : > { %s229_s20 = scalar_lea.vmem %s740_s1, %s697_s17  ;;  %s225_s23 = scalar_lea.vmem %s739_s0, %s697_s17  ;;  %v586_v5 = vld [vmem:[%s236_s26] ss:$0 sm:$0xff] }
  0x10   : > { %v244_v1 = vld [vmem:[%s229_s20] sm:$0xf]  ;;  %s233_s30 = scalar_lea.vmem %s741_s2, %s697_s17  ;;  %s240_s8 = scalar_lea.vmem %s743_s4, %s697_s17 }
  0x11   : > { %v251_v2 = vsel %vm246_vm1, %v244_v1, 0  ;;  %v243_v3 = vld [vmem:[%s225_s23] sm:$0xf]  ;;  %v589_v12 = vcombine.low %v244_v1, %v244_v1 }
  0x12   : > { %604 = vmatpush3.bf16.xpose.msra.mxu0 %v251_v2  ;;  %v588_v13 = vcombine.low %v243_v3, %v243_v3  ;;  %v245_v19 = vld [vmem:[%s233_s30] sm:$0xf] }
  0x13   : > { %621 = vmatprep.subr.bf16.mxu0 %v658_v0  ;;  %369 = vrot.lane.b32.xlu1 %v589_v12, %s660_s27  ;;  %v319_v20 = vsel %vm317_vm3, %v245_v19, 0  ;;  %v591_v39 = vcombine.low %v245_v19, %v245_v19 }
  0x14   : > { %610 = vmatpush3.bf16.msra.mxu1 %v319_v20 }
  0x15   : > { %615 = vmatprep.subr.bf16.mxu1 %v658_v0 }
  0x17   : > { %364 = vrot.lane.b32.xlu1 %v588_v13, %s660_s27 }
  0x19   : > { %606 = vmatmul.mubr.msk.bf16.vlgmr.msra.gmra.mrb[0].mxu0 %vm246_vm1, %v243_v3 }
  0x1a   : > { %623 = vmatprep.mubr.msk.bf16.mxu0 %vm659_vm0, %v658_v0 }
  0x85   : > { %v370_v23 = vpop.permute.xlu1 %369 }
  0x86   : > { %v375_v25 = vsel %vm246_vm1, %v370_v23, 0 }
  0x89   : > { %v365_v27 = vpop.permute.xlu1 %364 }
  0xec   : > { %v287_v4 = vpop.f32.mrb[0].mxu0 }
  0xed   : > { %v293_v6 = vmul.f32 0.25, %v287_v4  ;;  %v607_v7 = vpop.f32.mrb[1].mxu0 }
  0xee   : > { %v290_v8 = vpop.f32.mrb[2].mxu0 }
  0xef   : > { %v608_v9 = vpop.f32.mrb[3].mxu0  ;;  %v300_v10 = vadd.f32 %v586_v5, %v293_v6 }
  0xf1   : > { %v302_v11 = vsel %vm301_vm2, %v300_v10, -inf }
  0xf2   : > { %303 = vmax.xlane.f32.xlu0 %v302_v11 }
 0x17f   : > { %v304_v14 = vpop.xlane.xlu0 %303 }
 0x180   : > { %v305_v15 = vsub.f32 %v300_v10, %v304_v14 }
 0x182   : > { %v306_v16 = vmul.f32 1.442695, %v305_v15 }
 0x184   : > { %642 = vpow2.f32 %v306_v16 }
 0x18e   : > { %v643_v17 = vpop.eup %642 }
 0x18f   : > { %v308_v18 = vsel %vm301_vm2, %v643_v17, 0.0 }
 0x190   : > { %309 = vadd.xlane.f32.xlu0 %v308_v18 }
 0x21d   : > { %v310_v21 = vpop.xlane.xlu0 %309 }
 0x21e   : > { %644 = vrcp.f32 %v310_v21 }
 0x228   : > { %v645_v22 = vpop.eup %644 }
 0x229   : > { %v312_v24 = vmul.f32 %v645_v22, %v643_v17 }
 0x22b   : > { %v313_v26 = vpack.c.bf16 %v312_v24, %v312_v24 }
 0x22d   : > { %612 = vmatmul.mubr.msk.bf16.vlgmr.msra.gmra.mrb[0].mxu1 %vm301_vm2, %v313_v26 }
 0x22e   : > { %616 = vmatpush3.bf16.xpose.msra.mxu1 %v375_v25  ;;  %617 = vmatprep.mubr.msk.bf16.mxu1 %vm659_vm0, %v658_v0 }
 0x235   : > { %618 = vmatmul.mubr.msk.bf16.vlgmr.msra.gmra.mrb[4].mxu1 %vm246_vm1, %v365_v27 }
 0x300   : > { %v355_v28 = vpop.f32.mrb[0].mxu1 }
 0x301   : > { %v613_v29 = vpop.f32.mrb[1].mxu1 }
 0x302   : > { %v358_v30 = vpop.f32.mrb[2].mxu1 }
 0x303   : > { %v614_v31 = vpop.f32.mrb[3].mxu1 }
 0x308   : > { %v411_v32 = vpop.f32.mrb[4].mxu1 }
 0x309   : > { %v417_v33 = vmul.f32 0.25, %v411_v32  ;;  %v619_v34 = vpop.f32.mrb[5].mxu1 }
 0x30a   : > { %v414_v35 = vpop.f32.mrb[6].mxu1 }
 0x30b   : > { %v620_v36 = vpop.f32.mrb[7].mxu1  ;;  %v418_v37 = vadd.f32 %v586_v5, %v417_v33 }
 0x30d   : > { %v419_v38 = vsel %vm301_vm2, %v418_v37, -inf }
 0x30e   : > { %420 = vmax.xlane.f32.xlu0 %v419_v38 }
 0x324   : > { %434 = vrot.lane.b32.xlu0 %v591_v39, %s660_s27 }
 0x39b   : > { %v421_v40 = vpop.xlane.xlu0 %420 }
 0x39c   : > { %v422_v41 = vsub.f32 %v418_v37, %v421_v40 }
 0x39e   : > { %v423_v42 = vmul.f32 1.442695, %v422_v41 }
 0x39f   : > { %v435_v45 = vpop.permute.xlu0 %434 }
 0x3a0   : > { %646 = vpow2.f32 %v423_v42  ;;  %v440_v46 = vsel %vm317_vm3, %v435_v45, 0 }
 0x3a1   : > { %622 = vmatpush3.bf16.msra.mxu0 %v440_v46 }
 0x3aa   : > { %v647_v43 = vpop.eup %646 }
 0x3ab   : > { %v425_v44 = vsel %vm301_vm2, %v647_v43, 0.0 }
 0x3ac   : > { %426 = vadd.xlane.f32.xlu1 %v425_v44 }
 0x439   : > { %v427_v47 = vpop.xlane.xlu1 %426 }
 0x43a   : > { %648 = vrcp.f32 %v427_v47 }
 0x444   : > { %v649_v48 = vpop.eup %648 }
 0x445   : > { %v429_v49 = vmul.f32 %v649_v48, %v647_v43 }
 0x447   : > { %v430_v50 = vpack.c.bf16 %v429_v49, %v429_v49 }
 0x449   : > { %624 = vmatmul.mubr.msk.bf16.vlgmr.msra.gmra.mrb[4].mxu0 %vm301_vm2, %v430_v50 }
 0x51c   : > { %v476_v51 = vpop.f32.mrb[4].mxu0 }
 0x51d   : > { %483 = vrot.lane.b32.xlu0 %v476_v51, %s661_s5  ;;  %v625_v52 = vpop.f32.mrb[5].mxu0 }
 0x51e   : > { %v479_v53 = vpop.f32.mrb[6].mxu0 }
 0x51f   : > { %v626_v54 = vpop.f32.mrb[7].mxu0 }
 0x58f   : > { %v484_v55 = vpop.permute.xlu0 %483 }
 0x590   : > { %v486_v56 = vsel %vm246_vm1, %v355_v28, %v484_v55 }
 0x591   : > { %v487_v57 = vpack.c.bf16 %v486_v56, %v486_v56 }
 0x593   : > { %489 = vst.msk [vmem:[%s240_s8] sm:$0xf] %vm488_vm4, %v487_v57 }
 0x594 PF: > { %s14_s15 = sadd.s32 1, %s656_s15  }
 0x595   : > { %p11_p4 = scmp.ge.s32.totalorder %s14_s15, 4  }
 0x597   :  { %13 = sbr.rel (!%p11_p4) target bundleno = 1 (0x1), region = 75 }

// kernel: _lambda_.11
= control target key start
LH: loop header
LB: loop body
LE: loop exit
PB: predicated region body
PF: predicated region fallthrough
CT: control target
= control target key end

     0   :  { %v343_v0 = vmov 0.0   ;;  %vm344_vm0 = vmmov 0   ;;  %vm60_vm1 = vcmask 261120   ;;  %vm113_vm2 = vcmask 257024   ;;  %s452_s1 = inlined_call_operand.vmem [shape: bf16[32,32], index: 1, kind: input, shape index: {}]   ;;  %s453_s2 = inlined_call_operand.vmem [shape: bf16[32,32], index: 2, kind: input, shape index: {}]   ;;  %s454_s0 = inlined_call_operand.vmem [shape: bf16[16,32], index: 0, kind: input, shape index: {}]   ;;  %s455_s3 = inlined_call_operand.vmem [shape: bf16[32,32], index: 3, kind: input, shape index: {}]   ;;  %s456_s4 = inlined_call_operand.vmem [shape: f32[1,32], index: 4, kind: input, shape index: {}]   ;;  %s457_s5 = inlined_call_operand.vmem [shape: f32[1,32], index: 5, kind: input, shape index: {}]   ;;  %s458_s7 = inlined_call_operand.vmem [shape: bf16[16,32], index: 7, kind: output, shape index: {0}]   ;;  %s459_s6 = inlined_call_operand.vmem [shape: f32[1,32], index: 6, kind: input, shape index: {}]   ;;  %s460_s8 = inlined_call_operand.vmem [shape: bf16[16,32], index: 8, kind: output, shape index: {1}]   ;;  %s461_s9 = inlined_call_operand.vmem [shape: bf16[16,32], index: 9, kind: output, shape index: {2}]  }
   0x1   :  { %310 = vmatprep.subr.bf16.mxu0 %v343_v0  ;;  %v336_v1 = vld [vmem:[%s452_s1] sm:$0xff]   ;;  %318 = vmatprep.subr.bf16.mxu1 %v343_v0  ;;  %v337_v2 = vld [vmem:[%s452_s1 + $0x8] sm:$0xff]  }
   0x2   :  { %314 = vmatprep.mubr.msk.bf16.mxu0 %vm344_vm0, %v343_v0  ;;  %322 = vmatprep.mubr.msk.bf16.mxu1 %vm344_vm0, %v343_v0  ;;  %v338_v3 = vld [vmem:[%s453_s2] sm:$0xff]   ;;  %v341_v5 = vld [vmem:[%s453_s2 + $0x8] sm:$0xff]  }
   0x3   :  { %311 = vmatpush3.bf16.msra.mxu0 %v336_v1  ;;  %319 = vmatpush3.bf16.msra.mxu1 %v338_v3  ;;  %v339_v4 = vld [vmem:[%s454_s0] sm:$0xff]   ;;  %v342_v7 = vld [vmem:[%s455_s3 + $0x8] sm:$0xff]  }
   0x4   :  { %312 = vmatprep.subr.bf16.mxu0 %v343_v0  ;;  %320 = vmatprep.subr.bf16.mxu1 %v343_v0  ;;  %v340_v6 = vld [vmem:[%s455_s3] sm:$0xff]  }
   0x5   :  { %v276_v8 = vld [vmem:[%s456_s4] ss:$0 sm:$0xff] }
   0x6   :  { %v283_v10 = vld [vmem:[%s457_s5] ss:$0 sm:$0xff] }
   0x7   :  { %313 = vmatpush3.bf16.msra.mxu0 %v337_v2  ;;  %321 = vmatpush3.bf16.msra.mxu1 %v341_v5  ;;  %v289_v25 = vld [vmem:[%s459_s6] ss:$0 sm:$0xff] }
   0x8   :  { %326 = vmatprep.subr.bf16.mxu0 %v343_v0 }
   0xa   :  { %315 = vmatmul.mubr.msk.bf16.vlgmr.msra.gmra.mrb[0].mxu0 %vm60_vm1, %v339_v4  ;;  %323 = vmatmul.mubr.msk.bf16.vlgmr.msra.gmra.mrb[0].mxu1 %vm60_vm1, %v339_v4 }
   0xb   :  { %327 = vmatpush3.bf16.msra.mxu0 %v340_v6  ;;  %330 = vmatprep.mubr.msk.bf16.mxu0 %vm344_vm0, %v343_v0 }
   0xc   :  { %328 = vmatprep.subr.bf16.mxu0 %v343_v0 }
   0xf   :  { %329 = vmatpush3.bf16.msra.mxu0 %v342_v7 }
  0x12   :  { %331 = vmatmul.mubr.msk.bf16.vlgmr.msra.gmra.mrb[4].mxu0 %vm60_vm1, %v339_v4 }
  0xdd   :  { %v98_v9 = vpop.f32.mrb[0].mxu0  ;;  %v173_v14 = vpop.f32.mrb[0].mxu1 }
  0xde   :  { %v99_v11 = vadd.f32 %v276_v8, %v98_v9  ;;  %v316_v12 = vpop.f32.mrb[1].mxu0  ;;  %v174_v18 = vadd.f32 %v283_v10, %v173_v14  ;;  %v324_v19 = vpop.f32.mrb[1].mxu1 }
  0xdf   :  { %v101_v13 = vpop.f32.mrb[2].mxu0  ;;  %v176_v20 = vpop.f32.mrb[2].mxu1 }
  0xe0   :  { %v295_v15 = vpack.c.bf16 %v99_v11, %v99_v11  ;;  %v102_v16 = vadd.f32 %v276_v8, %v101_v13  ;;  %v317_v17 = vpop.f32.mrb[3].mxu0  ;;  %v297_v22 = vpack.c.bf16 %v174_v18, %v174_v18  ;;  %v177_v23 = vadd.f32 %v283_v10, %v176_v20  ;;  %v325_v24 = vpop.f32.mrb[3].mxu1 }
  0xe2   :  { %114 = vst.msk [vmem:[%s458_s7] sm:$0xf] %vm113_vm2, %v295_v15  ;;  %v296_v21 = vpack.c.bf16 %v102_v16, %v102_v16  ;;  %188 = vst.msk [vmem:[%s460_s8] sm:$0xf] %vm113_vm2, %v297_v22  ;;  %v298_v26 = vpack.c.bf16 %v177_v23, %v177_v23 }
  0xe4   :  { %115 = vst.msk [vmem:[%s458_s7 + $0x4] sm:$0xf] %vm113_vm2, %v296_v21  ;;  %189 = vst.msk [vmem:[%s460_s8 + $0x4] sm:$0xf] %vm113_vm2, %v298_v26 }
  0xe5   :  { %v247_v27 = vpop.f32.mrb[4].mxu0 }
  0xe6   :  { %v248_v28 = vadd.f32 %v289_v25, %v247_v27  ;;  %v332_v29 = vpop.f32.mrb[5].mxu0 }
  0xe7   :  { %v250_v30 = vpop.f32.mrb[6].mxu0 }
  0xe8   :  { %v299_v31 = vpack.c.bf16 %v248_v28, %v248_v28  ;;  %v251_v32 = vadd.f32 %v289_v25, %v250_v30  ;;  %v333_v33 = vpop.f32.mrb[7].mxu0 }
  0xea   :  { %262 = vst.msk [vmem:[%s461_s9] sm:$0xf] %vm113_vm2, %v299_v31  ;;  %v300_v34 = vpack.c.bf16 %v251_v32, %v251_v32 }
  0xec   :  { %263 = vst.msk [vmem:[%s461_s9 + $0x4] sm:$0xf] %vm113_vm2, %v300_v34 }

// kernel: _lambda_.14
= control target key start
LH: loop header
LB: loop body
LE: loop exit
PB: predicated region body
PF: predicated region fallthrough
CT: control target
= control target key end

     0   :  { %v332_v0 = vmov 0.0   ;;  %vm333_vm0 = vmmov 0   ;;  %vm57_vm1 = vcmask 261120   ;;  %vm160_vm2 = vcmask 523264   ;;  %s418_s1 = inlined_call_operand.vmem [shape: bf16[32,64], index: 1, kind: input, shape index: {}]   ;;  %s419_s0 = inlined_call_operand.vmem [shape: bf16[16,32], index: 0, kind: input, shape index: {}]   ;;  %s420_s3 = inlined_call_operand.vmem [shape: bf16[64,32], index: 3, kind: input, shape index: {}]   ;;  %s421_s2 = inlined_call_operand.vmem [shape: f32[1,64], index: 2, kind: input, shape index: {}]   ;;  %s422_s4 = inlined_call_operand.vmem [shape: f32[1,32], index: 4, kind: input, shape index: {}]   ;;  %s423_s5 = inlined_call_operand.vmem [shape: f32[1,32], index: 5, kind: input, shape index: {}]   ;;  %s424_s6 = inlined_call_operand.vmem [shape: f32[1,32], index: 6, kind: input, shape index: {}]   ;;  %s425_s7 = inlined_call_operand.vmem [shape: bf16[16,32], index: 7, kind: output, shape index: {}]  }
   0x1   :  { %294 = vmatprep.subr.bf16.mxu0 %v332_v0  ;;  %v316_v1 = vld [vmem:[%s418_s1] sm:$0xff]   ;;  %298 = vmatprep.mubr.msk.bf16.mxu0 %vm333_vm0, %v332_v0  ;;  %v317_v2 = vld [vmem:[%s418_s1 + $0x8] sm:$0xff]   ;;  %v321_v6 = vld [vmem:[%s420_s3 + $0x10] sm:$0xff]   ;;  %vm262_vm3 = vcmask 257024  }
   0x2   :  { %302 = vmatprep.subr.bf16.mxu1 %v332_v0  ;;  %310 = vmatprep.mubr.msk.bf16.mxu1 %vm333_vm0, %v332_v0  ;;  %v27_v3 = vld [vmem:[%s419_s0] sm:$0xff]   ;;  %v320_v5 = vld [vmem:[%s420_s3 + $0x8] sm:$0xff]   ;;  %v322_v7 = vld [vmem:[%s420_s3 + $0x18] sm:$0xff]  }
   0x3   :  { %295 = vmatpush3.bf16.msra.mxu0 %v316_v1  ;;  %v319_v4 = vld [vmem:[%s420_s3] sm:$0xff]   ;;  %v205_v35 = vunpack.c.l.bf16 %v27_v3  ;;  %v206_v39 = vunpack.c.h.bf16 %v27_v3 }
   0x4   :  { %296 = vmatprep.subr.bf16.mxu0 %v332_v0  ;;  %303 = vmatpush3.bf16.msra.mxu1 %v319_v4  ;;  %v269_v8 = vld [vmem:[%s421_s2] ss:$0 sm:$0xff] }
   0x5   :  { %304 = vmatprep.subr.bf16.mxu1 %v332_v0  ;;  %v274_v34 = vld [vmem:[%s422_s4] ss:$0 sm:$0xff] }
   0x7   :  { %297 = vmatpush3.bf16.msra.mxu0 %v317_v2  ;;  %v281_v2 = vld [vmem:[%s424_s6] ss:$0 sm:$0xff] }
   0x8   :  { %305 = vmatpush3.bf16.msra.mxu1 %v320_v5 }
   0x9   :  { %306 = vmatprep.subr.bf16.mxu1 %v332_v0 }
   0xa   :  { %299 = vmatmul.mubr.msk.bf16.vlgmr.msra.gmra.mrb[0].mxu0 %vm57_vm1, %v27_v3 }
   0xc   :  { %307 = vmatpush3.bf16.msra.mxu1 %v321_v6 }
   0xd   :  { %308 = vmatprep.subr.bf16.mxu1 %v332_v0  ;;  %v280_v0 = vld [vmem:[%s423_s5] ss:$0 sm:$0xff] }
  0x10   :  { %309 = vmatpush3.bf16.msra.mxu1 %v322_v7 }
  0xdd   :  { %v95_v9 = vpop.f32.mrb[0].mxu0 }
  0xde   :  { %v96_v10 = vadd.f32 %v269_v8, %v95_v9  ;;  %v300_v11 = vpop.f32.mrb[1].mxu0 }
  0xdf   :  { %v98_v12 = vpop.f32.mrb[2].mxu0 }
  0xe0   :  { %v104_v13 = vmul.f32 0.044715, %v96_v10  ;;  %v99_v14 = vadd.f32 %v269_v8, %v98_v12  ;;  %v301_v15 = vpop.f32.mrb[3].mxu0  ;;  %v102_v28 = vmul.f32 0.5, %v96_v10 }
  0xe2   :  { %v106_v16 = vmul.f32 %v104_v13, %v96_v10  ;;  %v105_v17 = vmul.f32 0.044715, %v99_v14  ;;  %v103_v29 = vmul.f32 0.5, %v99_v14 }
  0xe4   :  { %v108_v18 = vmul.f32 %v106_v16, %v96_v10  ;;  %v107_v19 = vmul.f32 %v105_v17, %v99_v14 }
  0xe6   :  { %v110_v20 = vadd.f32 %v108_v18, %v96_v10  ;;  %v109_v21 = vmul.f32 %v107_v19, %v99_v14 }
  0xe8   :  { %v112_v22 = vmul.f32 0.7978846, %v110_v20  ;;  %v111_v23 = vadd.f32 %v109_v21, %v99_v14 }
  0xea   :  { %324 = vtanh.f32 %v112_v22  ;;  %v113_v24 = vmul.f32 0.7978846, %v111_v23 }
  0xec   :  { %326 = vtanh.f32 %v113_v24 }
  0xf4   :  { %v325_v25 = vpop.eup %324 }
  0xf5   :  { %v116_v26 = vadd.f32 1.0, %v325_v25 }
  0xf6   :  { %v327_v27 = vpop.eup %326 }
  0xf7   :  { %v117_v30 = vadd.f32 1.0, %v327_v27  ;;  %v118_v31 = vmul.f32 %v116_v26, %v102_v28 }
  0xf9   :  { %v119_v32 = vmul.f32 %v117_v30, %v103_v29 }
  0xfb   :  { %v120_v33 = vpack.c.bf16 %v119_v32, %v118_v31 }
  0xfd   :  { %311 = vmatmul.mubr.msk.bf16.vlgmr.msra.gmra.mrb[0].mxu1 %vm160_vm2, %v120_v33 }
 0x1d0   :  { %v198_v36 = vpop.f32.mrb[0].mxu1 }
 0x1d1   :  { %v199_v37 = vadd.f32 %v274_v34, %v198_v36  ;;  %v312_v38 = vpop.f32.mrb[1].mxu1 }
 0x1d2   :  { %v201_v40 = vpop.f32.mrb[2].mxu1 }
 0x1d3   :  { %v202_v41 = vadd.f32 %v274_v34, %v201_v40  ;;  %v313_v42 = vpop.f32.mrb[3].mxu1  ;;  %v207_v43 = vadd.f32 %v205_v35, %v199_v37 }
 0x1d5   :  { %v209_v44 = vsel %vm57_vm1, %v207_v43, 0.0  ;;  %v208_v45 = vadd.f32 %v206_v39, %v202_v41 }
 0x1d6   :  { %210 = vadd.xlane.f32.xlu0 %v209_v44 }
 0x1d7   :  { %v212_v46 = vsel %vm57_vm1, %v208_v45, 0.0 }
 0x1da   :  { %213 = vadd.xlane.f32.xlu0 %v212_v46 }
 0x263   :  { %v211_v47 = vpop.xlane.xlu0 %210 }
 0x264   :  { %v216_v48 = vmul.f32 0.03125, %v211_v47 }
 0x266   :  { %v218_v49 = vsub.f32 %v207_v43, %v216_v48 }
 0x267   :  { %v214_v50 = vpop.xlane.xlu0 %213 }
 0x268   :  { %v217_v51 = vmul.f32 0.03125, %v214_v50  ;;  %v220_v52 = vmul.f32 %v218_v49, %v218_v49 }
 0x26a   :  { %v219_v53 = vsub.f32 %v208_v45, %v217_v51  ;;  %v222_v54 = vsel %vm57_vm1, %v220_v52, 0.0 }
 0x26b   :  { %223 = vadd.xlane.f32.xlu1 %v222_v54 }
 0x26c   :  { %v221_v55 = vmul.f32 %v219_v53, %v219_v53 }
 0x26e   :  { %v225_v56 = vsel %vm57_vm1, %v221_v55, 0.0 }
 0x26f   :  { %226 = vadd.xlane.f32.xlu1 %v225_v56 }
 0x2f8   :  { %v224_v57 = vpop.xlane.xlu1 %223 }
 0x2f9   :  { %v228_v58 = vmul.f32 0.03125, %v224_v57 }
 0x2fb   :  { %v230_v59 = vadd.f32 1e-12, %v228_v58 }
 0x2fc   :  { %v227_v60 = vpop.xlane.xlu1 %226 }
 0x2fd   :  { %328 = vrsqrt.f32 %v230_v59  ;;  %v229_v61 = vmul.f32 0.03125, %v227_v60 }
 0x2ff   :  { %v231_v62 = vadd.f32 1e-12, %v229_v61 }
 0x301   :  { %330 = vrsqrt.f32 %v231_v62 }
 0x307   :  { %v329_v63 = vpop.eup %328 }
 0x308   :  { %v234_v1 = vmul.f32 %v329_v63, %v218_v49 }
 0x30a   :  { %v243_v3 = vmul.f32 %v280_v0, %v234_v1 }
 0x30b   :  { %v331_v4 = vpop.eup %330 }
 0x30c   :  { %v252_v5 = vadd.f32 %v281_v2, %v243_v3  ;;  %v235_v6 = vmul.f32 %v331_v4, %v219_v53 }
 0x30e   :  { %v284_v7 = vpack.c.bf16 %v252_v5, %v252_v5  ;;  %v244_v8 = vmul.f32 %v280_v0, %v235_v6 }
 0x310   :  { %263 = vst.msk [vmem:[%s425_s7] sm:$0xf] %vm262_vm3, %v284_v7  ;;  %v253_v9 = vadd.f32 %v281_v2, %v244_v8 }
 0x312   :  { %v285_v10 = vpack.c.bf16 %v253_v9, %v253_v9 }
 0x314   :  { %264 = vst.msk [vmem:[%s425_s7 + $0x4] sm:$0xf] %vm262_vm3, %v285_v10 }

// kernel: _lambda_.19
= control target key start
LH: loop header
LB: loop body
LE: loop exit
PB: predicated region body
PF: predicated region fallthrough
CT: control target
= control target key end

     0   :  { %v379_v1 = vmov 0.0   ;;  %vm380_vm0 = vmmov 0   ;;  %s453_s0 = inlined_call_operand.vmem [shape: bf16[2,32], index: 0, kind: input, shape index: {}]   ;;  %s454_s1 = inlined_call_operand.vmem [shape: bf16[32,32], index: 1, kind: input, shape index: {}]   ;;  %s455_s2 = inlined_call_operand.vmem [shape: f32[1,32], index: 2, kind: input, shape index: {}]   ;;  %s456_s3 = inlined_call_operand.vmem [shape: bf16[32,2], index: 3, kind: input, shape index: {}]   ;;  %s457_s4 = inlined_call_operand.vmem [shape: f32[1,2], index: 4, kind: input, shape index: {}]   ;;  %s458_s5 = inlined_call_operand.hbm [shape: f32[2,2], index: 5, kind: output, shape index: {}]  }
   0x1   :  { %v345_v0 = vld [vmem:[%s454_s1] sm:$0xff]   ;;  %310 = vmatprep.subr.bf16.mxu0 %v379_v1  ;;  %318 = vmatprep.subr.bf16.mxu1 %v379_v1  ;;  %v346_v2 = vld [vmem:[%s454_s1 + $0x8] sm:$0xff]  }
   0x2   :  { %311 = vmatpush3.bf16.msra.mxu0 %v345_v0  ;;  %314 = vmatprep.mubr.msk.bf16.mxu0 %vm380_vm0, %v379_v1 }
   0x3   :  { %312 = vmatprep.subr.bf16.mxu0 %v379_v1  ;;  %319 = vmatpush3.bf16.msra.mxu1 %v345_v0 }
   0x4   :  { %320 = vmatprep.subr.bf16.mxu1 %v379_v1  ;;  %322 = vmatprep.mubr.msk.bf16.mxu1 %vm380_vm0, %v379_v1 }
   0x5   :  { %10 = vsyncpa [#allocation3], 0  ;;  %v22_v3 = vld [vmem:[%s453_s0] sm:$0x1]  ;;  %vm46_vm1 = vcmask 261120   ;;  %v348_v36 = vld [vmem:[%s456_s3 + $0x8] sm:$0xff]  }
   0x6   :  { %313 = vmatpush3.bf16.msra.mxu0 %v346_v2  ;;  %v288_v4 = vld [vmem:[%s455_s2] ss:$0 sm:$0xff]  ;;  %s381_s28 = smov [#allocation2]   ;;  %vm272_vm2 = vcmask 9216  }
   0x7   :  { %321 = vmatpush3.bf16.msra.mxu1 %v346_v2  ;;  %326 = vmatprep.subr.bf16.mxu0 %v379_v1  ;;  %v347_v35 = vld [vmem:[%s456_s3] sm:$0xff]   ;;  %s280_s29 = sshll.u32 %s381_s28, 4  ;;  %s281_s29 = int_to_ptr.vmem [resolvable:$true] %s280_s29 }
   0x8   :  { %334 = vmatprep.subr.bf16.mxu1 %v379_v1  ;;  %v294_v52 = vld [vmem:[%s457_s4] ss:$0 sm:$0xff]  ;;  %s355_s30 = scalar_lea.vmem %s281_s29, 32  ;;  %p360_p1 = scmp.lt.s32.totalorder %s281_s29, %s281_s29 }
   0x9   :  { %315 = vmatmul.mubr.msk.bf16.vlgmr.msra.gmra.mrb[0].mxu0 %vm46_vm1, %v22_v3  ;;  %p356_p0 = scmp.ne.s32.totalorder %s281_s29, %s355_s30  ;;  %p361_p2 = scmp.lt.s32.totalorder %s355_s30, %s355_s30 }
   0xa   :  { %327 = vmatpush3.bf16.msra.mxu0 %v345_v0  ;;  %330 = vmatprep.mubr.msk.bf16.mxu0 %vm380_vm0, %v379_v1 }
   0xb   :  { %328 = vmatprep.subr.bf16.mxu0 %v379_v1  ;;  %p362_p3 = por %p361_p2, %p360_p1 }
   0xd   :  { %p363_p4 = pnand %p362_p3, %p356_p0 }
   0xe   :  { %329 = vmatpush3.bf16.msra.mxu0 %v346_v2 }
  0xdc   :  { %v84_v5 = vpop.f32.mrb[0].mxu0 }
  0xdd   :  { %v85_v6 = vadd.f32 %v288_v4, %v84_v5  ;;  %v316_v7 = vpop.f32.mrb[1].mxu0 }
  0xde   :  { %v87_v8 = vpop.f32.mrb[2].mxu0 }
  0xdf   :  { %v91_v9 = vmul.f32 0.044715, %v85_v6  ;;  %v317_v10 = vpop.f32.mrb[3].mxu0  ;;  %v90_v16 = vmul.f32 0.5, %v85_v6 }
  0xe1   :  { %v92_v11 = vmul.f32 %v91_v9, %v85_v6 }
  0xe3   :  { %v93_v12 = vmul.f32 %v92_v11, %v85_v6 }
  0xe5   :  { %v94_v13 = vadd.f32 %v93_v12, %v85_v6 }
  0xe7   :  { %v95_v14 = vmul.f32 0.7978846, %v94_v13 }
  0xe9   :  { %349 = vtanh.f32 %v95_v14 }
  0xf3   :  { %v350_v15 = vpop.eup %349 }
  0xf4   :  { %v97_v17 = vadd.f32 1.0, %v350_v15 }
  0xf6   :  { %v98_v18 = vmul.f32 %v97_v17, %v90_v16 }
  0xf8   :  { %v99_v19 = vpack.c.bf16 %v98_v18, %v98_v18 }
  0xfa   :  { %323 = vmatmul.mubr.msk.bf16.vlgmr.msra.gmra.mrb[0].mxu1 %vm46_vm1, %v99_v19 }
  0xfb   :  { %338 = vmatprep.mubr.msk.bf16.mxu1 %vm380_vm0, %v379_v1  ;;  %335 = vmatpush3.bf16.msra.mxu1 %v347_v35 }
  0xfc   :  { %336 = vmatprep.subr.bf16.mxu1 %v379_v1 }
  0xff   :  { %337 = vmatpush3.bf16.msra.mxu1 %v348_v36 }
 0x1cd   :  { %v137_v20 = vpop.f32.mrb[0].mxu1 }
 0x1ce   :  { %v138_v21 = vadd.f32 %v288_v4, %v137_v20  ;;  %v324_v22 = vpop.f32.mrb[1].mxu1 }
 0x1cf   :  { %v140_v23 = vpop.f32.mrb[2].mxu1 }
 0x1d0   :  { %v144_v24 = vmul.f32 0.044715, %v138_v21  ;;  %v325_v25 = vpop.f32.mrb[3].mxu1  ;;  %v143_v31 = vmul.f32 0.5, %v138_v21 }
 0x1d2   :  { %v145_v26 = vmul.f32 %v144_v24, %v138_v21 }
 0x1d4   :  { %v146_v27 = vmul.f32 %v145_v26, %v138_v21 }
 0x1d6   :  { %v147_v28 = vadd.f32 %v146_v27, %v138_v21 }
 0x1d8   :  { %v148_v29 = vmul.f32 0.7978846, %v147_v28 }
 0x1da   :  { %351 = vtanh.f32 %v148_v29 }
 0x1e4   :  { %v352_v30 = vpop.eup %351 }
 0x1e5   :  { %v150_v32 = vadd.f32 1.0, %v352_v30 }
 0x1e7   :  { %v151_v33 = vmul.f32 %v150_v32, %v143_v31 }
 0x1e9   :  { %v152_v34 = vpack.c.bf16 %v151_v33, %v151_v33 }
 0x1eb   :  { %331 = vmatmul.mubr.msk.bf16.vlgmr.msra.gmra.mrb[4].mxu0 %vm46_vm1, %v152_v34 }
 0x2be   :  { %v190_v37 = vpop.f32.mrb[4].mxu0 }
 0x2bf   :  { %v191_v38 = vadd.f32 %v288_v4, %v190_v37  ;;  %v332_v39 = vpop.f32.mrb[5].mxu0 }
 0x2c0   :  { %v193_v40 = vpop.f32.mrb[6].mxu0 }
 0x2c1   :  { %v197_v41 = vmul.f32 0.044715, %v191_v38  ;;  %v333_v42 = vpop.f32.mrb[7].mxu0  ;;  %v196_v48 = vmul.f32 0.5, %v191_v38 }
 0x2c3   :  { %v198_v43 = vmul.f32 %v197_v41, %v191_v38 }
 0x2c5   :  { %v199_v44 = vmul.f32 %v198_v43, %v191_v38 }
 0x2c7   :  { %v200_v45 = vadd.f32 %v199_v44, %v191_v38 }
 0x2c9   :  { %v201_v46 = vmul.f32 0.7978846, %v200_v45 }
 0x2cb   :  { %353 = vtanh.f32 %v201_v46 }
 0x2d5   :  { %v354_v47 = vpop.eup %353 }
 0x2d6   :  { %v203_v49 = vadd.f32 1.0, %v354_v47 }
 0x2d8   :  { %v204_v50 = vmul.f32 %v203_v49, %v196_v48 }
 0x2da   :  { %v205_v51 = vpack.c.bf16 %v204_v50, %v204_v50 }
 0x2dc   :  { %339 = vmatmul.mubr.msk.bf16.vlgmr.msra.gmra.mrb[4].mxu1 %vm46_vm1, %v205_v51 }
 0x3af   :  { %v266_v53 = vpop.f32.mrb[4].mxu1 }
 0x3b0   :  { %v267_v54 = vadd.f32 %v294_v52, %v266_v53  ;;  %v340_v55 = vpop.f32.mrb[5].mxu1 }
 0x3b1   :  { %v269_v56 = vpop.f32.mrb[6].mxu1 }
 0x3b2   :  { %v341_v57 = vpop.f32.mrb[7].mxu1  ;;  %273 = vst.msk [vmem:[#allocation2] sm:$0x3] %vm272_vm2, %v267_v54 }
 0x3b3   :  { %366 = shalt.err (!%p363_p4)
}
 0x3b4   :  { %s367_s4 = scalar_lea.hbm %s458_s5, 32 }
 0x3b5   :  { %p368_p5 = scmp.ne.s32.totalorder %s458_s5, %s367_s4  ;;  %p371_p6 = scmp.lt.u32.totalorder %s367_s4, %s458_s5 }
 0x3b7   :  { %p373_p7 = pnand %p371_p6, %p368_p5 }
 0x3b9   :  { %376 = shalt.err (!%p373_p7)
}
 0x3ba   :  { %283 = dma.vmem_to_hbm [thread:$0]  %s281_s29, 32, %s458_s5, [#allocation3]  }
 0x3bb   :  { %377 = dma.done.wait [#allocation3], 32  }
 0x3bc   :  { %378 = vsyncadd [#allocation3], 4294967264 }
 0x3bd   :  { %287 = vsyncpa [#allocation3], 1 }

</bundles_post_ra>
